<compile_context>
chip_gen: v7x
topology: tpu7x:2x2x1
jax: 0.10.0
libtpu: 0.0.40
codegen_flags: <defaults>
</compile_context>

<pallas_src>
import functools

import jax
import jax.numpy as jnp
import numpy as np
from jax.experimental import pallas as pl
from jax.experimental.pallas import tpu as pltpu

# Model hyper-parameters (from the PyTorch module / script constants)
SIZE_VOCAB = 32
DIM_EMBEDDING = 10
SIZE_CONTEXT = 3
HIDDEN_SIZE = 64

_LANES = 128  # padded K / H / V (one vreg lane width, MXU-aligned)


def ngram_kernel(idx_ref, t1_ref, t2_ref, out_ref, *, vocab, bias_col):
    # idx_ref: (TB, C)    int32 raw context word ids
    # t1_ref:  (128, 128) f32   fused (block-diag embed @ W1), b1 in row bias_col,
    #                           and t1[bias_col, ONE_COL] == 1.0
    # t2_ref:  (128, 128) f32   W2 (rows 0..H-1), b2 in row ONE_COL, padded vocab
    #                           lanes of that row set to -1e30
    # out_ref: (TB, 128)  f32   lane-dense log-probabilities (first `vocab` valid)
    tb, num_ctx = idx_ref.shape
    kp = t1_ref.shape[0]

    lane = jax.lax.broadcasted_iota(jnp.int32, (tb, kp), 1)
    idx = idx_ref[...]

    # "C-hot" mask: one 1.0 per context slot at column c*V + idx[b, c], plus the
    # hard-wired bias column.  Out-of-range ids match nothing (zero embedding).
    mask = (lane == bias_col).astype(jnp.float32)
    for c in range(num_ctx):  # C = 3, tiny static loop (VPU compares)
        col = idx[:, c:c + 1]
        valid = (col >= 0) & (col < vocab)
        mask = mask + ((lane == (col + c * vocab)) & valid).astype(jnp.float32)

    # Fused gather + fclayer1 (+b1 via bias column), then ReLU.  One MXU matmul.
    h = jnp.maximum(
        jnp.dot(mask, t1_ref[...], preferred_element_type=jnp.float32), 0.0)

    # fclayer2 (+b2 via the ones column of h).  Padded vocab lanes -> -1e30.
    logits = jnp.dot(h, t2_ref[...], preferred_element_type=jnp.float32)

    # log_softmax over the (padded) vocab axis; padded lanes contribute exp(~-1e30)=0.
    m = jnp.max(logits, axis=-1, keepdims=True)
    shifted = logits - m
    lse = jnp.log(jnp.sum(jnp.exp(shifted), axis=-1, keepdims=True))
    out_ref[...] = shifted - lse


def n_gram_embed_forward(indices, emb, w1_flat, b1, w2, b2, *, block_b=512):
    """Batched Pallas forward pass.

    indices: (B, C) int32 context word ids (each row = one module forward()).
    emb:     (V, D) f32 embedding table.
    w1_flat: (C*D, H) f32  (== fclayer1.weight.T).
    b1:      (1, H) f32.
    w2:      (H, V) f32    (== fclayer2.weight.T).
    b2:      (1, V) f32.
    Returns (B, V) f32 log-probabilities.
    """
    B, C = indices.shape
    V, D = emb.shape
    H = w1_flat.shape[1]

    KP = HP = VP = _LANES
    bias_col = C * V          # mask column that carries b1 (and the ones for b2)
    one_col = H               # hidden column hard-wired to 1.0 (carries b2)
    assert C * V < KP and H < HP and V <= VP

    f32 = jnp.float32

    # --- fused table 1: (C-hot gather) @ W1, bias row, ones column ------------
    emb_blockdiag = jnp.kron(jnp.eye(C, dtype=f32), emb.astype(f32))   # (C*V, C*D)
    fused1 = emb_blockdiag @ w1_flat.astype(f32)                       # (C*V, H)
    t1 = jnp.zeros((KP, HP), f32)
    t1 = t1.at[:C * V, :H].set(fused1)
    t1 = t1.at[bias_col, :H].set(jnp.reshape(b1, (-1,)).astype(f32))
    t1 = t1.at[bias_col, one_col].set(1.0)

    # --- table 2: W2, b2 row, large-negative logits for padded vocab lanes ----
    t2 = jnp.zeros((HP, VP), f32)
    t2 = t2.at[:H, :V].set(w2.astype(f32))
    t2 = t2.at[one_col, :V].set(jnp.reshape(b2, (-1,)).astype(f32))
    t2 = t2.at[one_col, V:].set(-1e30)   # finite, not -inf (avoids NaN in shift)

    # --- batch tiling: big tiles, grid >= 2 when possible (v7x: 2 TCs) --------
    tile = max(1, min(block_b, B))
    if B >= 16 and tile > (B + 1) // 2:
        tile = (B + 1) // 2
    tile = max(8, ((tile + 7) // 8) * 8)          # sublane-aligned block rows
    b_pad = ((B + tile - 1) // tile) * tile
    grid = (b_pad // tile,)

    idx32 = indices.astype(jnp.int32)
    if b_pad != B:
        pad = jnp.full((b_pad - B, C), -1, jnp.int32)   # invalid -> zero embedding
        idx32 = jnp.concatenate([idx32, pad], axis=0)

    kernel = functools.partial(ngram_kernel, vocab=V, bias_col=bias_col)

    out = pl.pallas_call(
        kernel,
        out_shape=jax.ShapeDtypeStruct((b_pad, VP), jnp.float32),
        grid=grid,
        in_specs=[
            pl.BlockSpec((tile, C), lambda i: (i, 0)),     # raw indices
            pl.BlockSpec((KP, HP), lambda i: (0, 0)),      # fused table 1 (resident)
            pl.BlockSpec((HP, VP), lambda i: (0, 0)),      # table 2 (resident)
        ],
        out_specs=pl.BlockSpec((tile, VP), lambda i: (i, 0)),  # lane-dense output
        compiler_params=pltpu.CompilerParams(
            dimension_semantics=("parallel",)),            # batch tiles across TCs
    )(idx32, t1, t2)

    return out[:B, :V]


def ref_forward(indices, emb, w1_flat, b1, w2, b2):
    """Pure-JAX reference matching the PyTorch forward semantics (batched rows)."""
    B = indices.shape[0]
    x = emb[indices].reshape(B, -1)                  # (B, C*D)
    h = jnp.maximum(x @ w1_flat + b1, 0.0)           # (B, H)
    logits = h @ w2 + b2                             # (B, V)
    return jax.nn.log_softmax(logits, axis=-1)


if __name__ == "__main__":
    key = jax.random.PRNGKey(0)
    k_emb, k_w1, k_b1, k_w2, k_b2, k_idx = jax.random.split(key, 6)

    B = 256  # batch of contexts -> two 128-row tiles (grid of 2)

    emb = jax.random.normal(k_emb, (SIZE_VOCAB, DIM_EMBEDDING), jnp.float32) * 0.1
    w1_flat = jax.random.normal(
        k_w1, (SIZE_CONTEXT * DIM_EMBEDDING, HIDDEN_SIZE), jnp.float32) * 0.1
    b1 = jax.random.normal(k_b1, (1, HIDDEN_SIZE), jnp.float32) * 0.1
    w2 = jax.random.normal(k_w2, (HIDDEN_SIZE, SIZE_VOCAB), jnp.float32) * 0.1
    b2 = jax.random.normal(k_b2, (1, SIZE_VOCAB), jnp.float32) * 0.1

    # B independent contexts of size_context word ids each.
    indices = jax.random.randint(k_idx, (B, SIZE_CONTEXT), 0, SIZE_VOCAB, jnp.int32)

    out = n_gram_embed_forward(indices, emb, w1_flat, b1, w2, b2, block_b=512)
    out = jax.block_until_ready(out)

    expected = ref_forward(indices, emb, w1_flat, b1, w2, b2)
    assert out.shape == (B, SIZE_VOCAB)
    np.testing.assert_allclose(np.asarray(out), np.asarray(expected),
                               rtol=1e-5, atol=1e-5)

    print("KERNEL_OK")
</pallas_src>

<mosaic_0001>
module attributes {stable_mosaic.version = 11 : i64} {
  func.func @ngram_kernel(%arg0: i32, %arg1: memref<128x3xi32, #tpu.memory_space<vmem>>, %arg2: memref<128x128xf32, #tpu.memory_space<vmem>>, %arg3: memref<128x128xf32, #tpu.memory_space<vmem>>, %arg4: memref<128x128xf32, #tpu.memory_space<vmem>>) attributes {dimension_semantics = [#tpu.dimension_semantics<parallel>], iteration_bounds = array<i64: 2>, scalar_prefetch = 0 : i64, scratch_operands = 0 : i64, tpu.core_type = #tpu.core_type<tc>, window_params = [{transform_indices = @transform_0, window_bounds = array<i64: 128, 3>}, {pipeline_mode = #tpu.pipeline_mode<synchronous>, transform_indices = @transform_1, window_bounds = array<i64: 128, 128>}, {pipeline_mode = #tpu.pipeline_mode<synchronous>, transform_indices = @transform_2, window_bounds = array<i64: 128, 128>}, {transform_indices = @transform_3, window_bounds = array<i64: 128, 128>}]} {
    %0 = tpu.iota {dimensions = array<i32: 1>} : vector<128x128xi32>
    %c0 = arith.constant 0 : index
    %c0_0 = arith.constant 0 : index
    %1 = vector.load %arg1[%c0, %c0_0] : memref<128x3xi32, #tpu.memory_space<vmem>>, vector<128x3xi32>
    %c96_i32 = arith.constant 96 : i32
    %2 = vector.broadcast %c96_i32 : i32 to vector<128x128xi32>
    %3 = arith.cmpi eq, %0, %2 : vector<128x128xi32>
    %4 = arith.extui %3 : vector<128x128xi1> to vector<128x128xi32>
    %5 = arith.sitofp %4 : vector<128x128xi32> to vector<128x128xf32>
    %6 = vector.extract_strided_slice %1 {offsets = [0, 0], sizes = [128, 1], strides = [1, 1]} : vector<128x3xi32> to vector<128x1xi32>
    %c0_i32 = arith.constant 0 : i32
    %7 = vector.broadcast %c0_i32 : i32 to vector<128x1xi32>
    %8 = arith.cmpi sge, %6, %7 : vector<128x1xi32>
    %c32_i32 = arith.constant 32 : i32
    %9 = vector.broadcast %c32_i32 : i32 to vector<128x1xi32>
    %10 = arith.cmpi slt, %6, %9 : vector<128x1xi32>
    %11 = arith.andi %8, %10 : vector<128x1xi1>
    %c0_i32_1 = arith.constant 0 : i32
    %12 = vector.broadcast %c0_i32_1 : i32 to vector<128x1xi32>
    %13 = arith.addi %6, %12 : vector<128x1xi32>
    %14 = vector.broadcast %13 : vector<128x1xi32> to vector<128x128xi32>
    %15 = arith.cmpi eq, %0, %14 : vector<128x128xi32>
    %16 = vector.broadcast %11 : vector<128x1xi1> to vector<128x128xi1>
    %17 = arith.andi %15, %16 : vector<128x128xi1>
    %18 = arith.extui %17 : vector<128x128xi1> to vector<128x128xi32>
    %19 = arith.sitofp %18 : vector<128x128xi32> to vector<128x128xf32>
    %20 = arith.addf %5, %19 : vector<128x128xf32>
    %21 = vector.extract_strided_slice %1 {offsets = [0, 1], sizes = [128, 1], strides = [1, 1]} : vector<128x3xi32> to vector<128x1xi32>
    %c0_i32_2 = arith.constant 0 : i32
    %22 = vector.broadcast %c0_i32_2 : i32 to vector<128x1xi32>
    %23 = arith.cmpi sge, %21, %22 : vector<128x1xi32>
    %c32_i32_3 = arith.constant 32 : i32
    %24 = vector.broadcast %c32_i32_3 : i32 to vector<128x1xi32>
    %25 = arith.cmpi slt, %21, %24 : vector<128x1xi32>
    %26 = arith.andi %23, %25 : vector<128x1xi1>
    %c32_i32_4 = arith.constant 32 : i32
    %27 = vector.broadcast %c32_i32_4 : i32 to vector<128x1xi32>
    %28 = arith.addi %21, %27 : vector<128x1xi32>
    %29 = vector.broadcast %28 : vector<128x1xi32> to vector<128x128xi32>
    %30 = arith.cmpi eq, %0, %29 : vector<128x128xi32>
    %31 = vector.broadcast %26 : vector<128x1xi1> to vector<128x128xi1>
    %32 = arith.andi %30, %31 : vector<128x128xi1>
    %33 = arith.extui %32 : vector<128x128xi1> to vector<128x128xi32>
    %34 = arith.sitofp %33 : vector<128x128xi32> to vector<128x128xf32>
    %35 = arith.addf %20, %34 : vector<128x128xf32>
    %36 = vector.extract_strided_slice %1 {offsets = [0, 2], sizes = [128, 1], strides = [1, 1]} : vector<128x3xi32> to vector<128x1xi32>
    %c0_i32_5 = arith.constant 0 : i32
    %37 = vector.broadcast %c0_i32_5 : i32 to vector<128x1xi32>
    %38 = arith.cmpi sge, %36, %37 : vector<128x1xi32>
    %c32_i32_6 = arith.constant 32 : i32
    %39 = vector.broadcast %c32_i32_6 : i32 to vector<128x1xi32>
    %40 = arith.cmpi slt, %36, %39 : vector<128x1xi32>
    %41 = arith.andi %38, %40 : vector<128x1xi1>
    %c64_i32 = arith.constant 64 : i32
    %42 = vector.broadcast %c64_i32 : i32 to vector<128x1xi32>
    %43 = arith.addi %36, %42 : vector<128x1xi32>
    %44 = vector.broadcast %43 : vector<128x1xi32> to vector<128x128xi32>
    %45 = arith.cmpi eq, %0, %44 : vector<128x128xi32>
    %46 = vector.broadcast %41 : vector<128x1xi1> to vector<128x128xi1>
    %47 = arith.andi %45, %46 : vector<128x128xi1>
    %48 = arith.extui %47 : vector<128x128xi1> to vector<128x128xi32>
    %49 = arith.sitofp %48 : vector<128x128xi32> to vector<128x128xf32>
    %50 = arith.addf %35, %49 : vector<128x128xf32>
    %c0_7 = arith.constant 0 : index
    %c0_8 = arith.constant 0 : index
    %51 = vector.load %arg2[%c0_7, %c0_8] : memref<128x128xf32, #tpu.memory_space<vmem>>, vector<128x128xf32>
    %cst = arith.constant dense<0.000000e+00> : vector<128x128xf32>
    %52 = tpu.matmul %50, %51, %cst {dimension_numbers = #tpu.dot_dimension_numbers<[1], [0], [0], [1], [0, 0, 1, 1], [], []>} : vector<128x128xf32>, vector<128x128xf32>, vector<128x128xf32> -> vector<128x128xf32>
    %cst_9 = arith.constant 0.000000e+00 : f32
    %53 = vector.broadcast %cst_9 : f32 to vector<128x128xf32>
    %54 = arith.maximumf %52, %53 : vector<128x128xf32>
    %c0_10 = arith.constant 0 : index
    %c0_11 = arith.constant 0 : index
    %55 = vector.load %arg3[%c0_10, %c0_11] : memref<128x128xf32, #tpu.memory_space<vmem>>, vector<128x128xf32>
    %cst_12 = arith.constant dense<0.000000e+00> : vector<128x128xf32>
    %56 = tpu.matmul %54, %55, %cst_12 {dimension_numbers = #tpu.dot_dimension_numbers<[1], [0], [0], [1], [0, 0, 1, 1], [], []>} : vector<128x128xf32>, vector<128x128xf32>, vector<128x128xf32> -> vector<128x128xf32>
    %cst_13 = arith.constant dense<0xFF800000> : vector<128xf32>
    %57 = vector.multi_reduction <maximumf>, %56, %cst_13 [1] : vector<128x128xf32> to vector<128xf32>
    %58 = vector.shape_cast %57 : vector<128xf32> to vector<128x1xf32>
    %59 = vector.broadcast %58 : vector<128x1xf32> to vector<128x128xf32>
    %60 = arith.subf %56, %59 : vector<128x128xf32>
    %61 = math.exp %60 : vector<128x128xf32>
    %cst_14 = arith.constant dense<0.000000e+00> : vector<128xf32>
    %62 = vector.multi_reduction <add>, %61, %cst_14 [1] : vector<128x128xf32> to vector<128xf32>
    %63 = vector.shape_cast %62 : vector<128xf32> to vector<128x1xf32>
    %64 = math.log %63 : vector<128x1xf32>
    %65 = vector.broadcast %64 : vector<128x1xf32> to vector<128x128xf32>
    %66 = arith.subf %60, %65 : vector<128x128xf32>
    %c0_15 = arith.constant 0 : index
    %c0_16 = arith.constant 0 : index
    %67 = vector.load %arg4[%c0_15, %c0_16] : memref<128x128xf32, #tpu.memory_space<vmem>>, vector<128x128xf32>
    tpu.vector_store %arg4[%c0_15, %c0_16], %66 {strides = array<i32>} : memref<128x128xf32, #tpu.memory_space<vmem>>, vector<128x128xf32>,
    return
  }
  func.func @transform_0(%arg0: i32) -> (i32, i32) {
    %c0_i32 = arith.constant 0 : i32
    %c0_i32_0 = arith.constant 0 : i32
    return %arg0, %c0_i32 : i32, i32
  }
  func.func @transform_1(%arg0: i32) -> (i32, i32) {
    %c0_i32 = arith.constant 0 : i32
    %c0_i32_0 = arith.constant 0 : i32
    %c0_i32_1 = arith.constant 0 : i32
    return %c0_i32, %c0_i32_0 : i32, i32
  }
  func.func @transform_2(%arg0: i32) -> (i32, i32) {
    %c0_i32 = arith.constant 0 : i32
    %c0_i32_0 = arith.constant 0 : i32
    %c0_i32_1 = arith.constant 0 : i32
    return %c0_i32, %c0_i32_0 : i32, i32
  }
  func.func @transform_3(%arg0: i32) -> (i32, i32) {
    %c0_i32 = arith.constant 0 : i32
    %c0_i32_0 = arith.constant 0 : i32
    return %arg0, %c0_i32 : i32, i32
  }
}

</mosaic_0001>

<bundles_post_ra>
// kernel: tpu_custom_call.1
= control target key start
LH: loop header
LB: loop body
LE: loop exit
PB: predicated region body
PF: predicated region fallthrough
CT: control target
= control target key end

     0   :  { %8 = vsyncpa [#allocation3], 0  ;;  %s2846_s0 = inlined_call_operand.vmem [shape: s32[256,3], index: 0, kind: input, shape index: {}]   ;;  %s2847_s1 = inlined_call_operand.vmem [shape: f32[128,128], index: 1, kind: input, shape index: {}]   ;;  %s2848_s2 = inlined_call_operand.vmem [shape: f32[128,128], index: 2, kind: input, shape index: {}]   ;;  %s2849_s3 = inlined_call_operand.hbm [shape: f32[256,128], index: 3, kind: output, shape index: {}]  }
   0x1   :  { %10 = vsyncpa [#allocation3 + $0x1], 0  ;;  %s1998_s12 = smov 0   ;;  %s2000_s13 = smov 0  }
   0x2   :  { %s2002_s14 = smov 0   ;;  %s2004_s15 = smov 0  }
   0x3 LB: > { %s2019_s16 = sadd.s32 4294967295, %s1969_s15   ;;  %s1455_s17 = sadd.s32 4294967294, %s1969_s15   ;;  %s1969_s15 = sphi %s2004_s15, %s2863_s15   ;;  %s1965_s14 = sphi %s2002_s14, %s2862_s14   ;;  %s1961_s13 = sphi %s2000_s13, %s2861_s13   ;;  %s1957_s12 = sphi %s1998_s12, %s2860_s12  }
   0x4   : > { %s2023_s18 = sadd.s32 1, %s1969_s15   ;;  %s91_s19 = sadd.s32 1, %s1965_s14 }
   0x5   : > { %s88_s20 = ssub.s32 %s1969_s15, %s2023_s18  ;;  %p101_p0 = scmp.ne.s32.totalorder %s1965_s14, %s1961_s13 }
   0x6   : > { %p89_p1 = scmp.eq.s32.totalorder %s88_s20, 0  ;;  %p102_p2 = scmp.eq.s32.totalorder %s2019_s16, 1 }
   0x7   : > { %p107_p3 = scmp.ne.s32.totalorder %s1961_s13, %s1957_s12  ;;  %p108_p4 = scmp.eq.s32.totalorder %s1455_s17, 1 }
   0x8   : > { %s2034_s21 = scalar_select %p89_p1, %s1965_s14, %s91_s19  }
   0x9   : > { %p2036_p5 = por %p102_p2, %p101_p0  ;;  %p2040_p6 = por %p108_p4, %p107_p3 }
   0xa   : > { %p1458_p7 = scmp.ge.s32.totalorder %s1969_s15, 1  ;;  %p141_p8 = scmp.lt.s32.totalorder %s1969_s15, 3 }
   0xc   : > { %p142_p9 = pnand %p1458_p7, %p141_p8 }
   0xd   : > { %s1460_s24 = sshll.u32 (!%p142_p9), %s2019_s16, 4  ;;  %v1971_v0 = vmov (!%p142_p9), 0   ;;  %v1972_v7 = vmov (!%p142_p9), 1   ;;  %v1973_v16 = vmov (!%p142_p9), 2   ;;  %v865_v34 = vld [vmem:[%s2847_s1] sm:$0xff] (!%p142_p9)  ;;  %v866_v35 = vld [vmem:[%s2847_s1 + $0x8] sm:$0xff] (!%p142_p9) }
   0xe   : > { %145 = sbr.rel (%p142_p9) target bundleno = 1185 (0x4a1), region = 32  ;;  %1803 = vset.pattern.permute.xlu1 (!%p142_p9), %v1971_v0  ;;  %1802 = vset.pattern.permute.xlu0 (!%p142_p9), %v1971_v0  ;;  %p166_p10 = scmp.lt.s32.totalorder (!%p142_p9), %s1460_s24, 31  ;;  %v1693_v37 = vpack.c.bf16 (!%p142_p9), %v866_v35, %v865_v34  ;;  %v867_v38 = vld [vmem:[%s2847_s1 + $0x10] sm:$0xff] (!%p142_p9)  ;;  %v868_v39 = vld [vmem:[%s2847_s1 + $0x18] sm:$0xff] (!%p142_p9)  ;;  %v869_v43 = vld [vmem:[%s2847_s1 + $0x20] sm:$0xff] (!%p142_p9) }
   0xf   : > { %v1697_v40 = vpack.c.bf16 (!%p142_p9), %v868_v39, %v867_v38  ;;  %v870_v44 = vld [vmem:[%s2847_s1 + $0x28] sm:$0xff] (!%p142_p9)  ;;  %v871_v47 = vld [vmem:[%s2847_s1 + $0x30] sm:$0xff] (!%p142_p9)  ;;  %v872_v48 = vld [vmem:[%s2847_s1 + $0x38] sm:$0xff] (!%p142_p9)  ;;  %s162_s17 = sand.u32 (!%p142_p9), 1, %s1961_s13   ;;  %s1975_s30 = smov (!%p142_p9), [#allocation2]  }
  0x10   : > { %1694 = vmatprep.subr.bf16.mxu0 (!%p142_p9), %v1693_v37  ;;  %v1701_v46 = vpack.c.bf16 (!%p142_p9), %v870_v44, %v869_v43  ;;  %v1705_v50 = vpack.c.bf16 (!%p142_p9), %v872_v48, %v871_v47  ;;  %v873_v51 = vld [vmem:[%s2847_s1 + $0x40] sm:$0xff] (!%p142_p9)  ;;  %v874_v52 = vld [vmem:[%s2847_s1 + $0x48] sm:$0xff] (!%p142_p9)  ;;  %v875_v56 = vld [vmem:[%s2847_s1 + $0x50] sm:$0xff] (!%p142_p9)  ;;  %v172_v48 = vlaneseq (!%p142_p9)  ;;  %s1459_s19 = sshll.u32 (!%p142_p9), %s162_s17, 7  ;;  %s1911_s4 = sshll.u32 (!%p142_p9), %s1975_s30, 4  ;;  %s1912_s4 = int_to_ptr.vmem [resolvable:$false] %s1911_s4 }
  0x11   : > { %1696 = vmatpush3.bf16.msra.mxu0 (!%p142_p9), %v1693_v37  ;;  %v1709_v54 = vpack.c.bf16 (!%p142_p9), %v874_v52, %v873_v51  ;;  %v876_v57 = vld [vmem:[%s2847_s1 + $0x58] sm:$0xff] (!%p142_p9)  ;;  %v877_v59 = vld [vmem:[%s2847_s1 + $0x60] sm:$0xff] (!%p142_p9)  ;;  %v878_v60 = vld [vmem:[%s2847_s1 + $0x68] sm:$0xff] (!%p142_p9)  ;;  %s2762_s20 = scalar_lea.vmem (!%p142_p9), [#allocation2], %s1459_s19  ;;  %s1913_s5 = scalar_lea.vmem (!%p142_p9), %s1912_s4, 4096 }
  0x12   : > { %1698 = vmatprep.subr.bf16.mxu0 (!%p142_p9), %v1697_v40  ;;  %v1713_v58 = vpack.c.bf16 (!%p142_p9), %v876_v57, %v875_v56  ;;  %v1717_v61 = vpack.c.bf16 (!%p142_p9), %v878_v60, %v877_v59  ;;  %v1974_v56 = vmov (!%p142_p9), 0.0  }
  0x15   : > { %s2865_s24 = smov (!%p166_p10, %s1460_s24), 31  ;;  %1700 = vmatpush3.bf16.msra.mxu0 %v1697_v40 }
  0x16   : > { %s1461_s25 = sshll.u32 %s2865_s24, 3  ;;  %1702 = vmatprep.subr.bf16.mxu0 %v1701_v46  ;;  %s1516_s24 = sshll.u32 %s2019_s16, 11 }
  0x17   : > { %s2052_s28 = scalar_lea.vmem %s2846_s0, %s1461_s25  ;;  %s1393_s25 = sshll.u32 %s2762_s20, 4  ;;  %s2798_s25 = int_to_ptr.vmem [resolvable:$true] %s1393_s25 }
  0x18   : > { %v2055_v1 = vld [vmem:[%s2052_s28 + $0x8] sm:$0xff]  ;;  %v2058_v2 = vld [vmem:[%s2052_s28] sm:$0xff]  ;;  %v2061_v3 = vld [vmem:[%s2052_s28 + $0x10] sm:$0xff]  ;;  %s2805_s16 = scalar_lea.sflag [#allocation3], %s162_s17  ;;  %s1907_s29 = scalar_lea.vmem %s2798_s25, 2048 }
  0x19   : > { %245 = vperm.xlu1 %1803, %v2055_v1   ;;  %242 = vperm.xlu0 %1802, %v2058_v2   ;;  %vm194_vm0 = vcmp.ge.s32.totalorder %v2055_v1, 0  ;;  %vm210_vm1 = vcmp.lt.s32.totalorder %v2055_v1, 32  ;;  %vm193_vm2 = vcmp.ge.s32.totalorder %v2058_v2, 0  ;;  %vm209_vm3 = vcmp.lt.s32.totalorder %v2058_v2, 32  ;;  %v2082_v8 = vld [vmem:[%s2052_s28 + $0x30] sm:$0xff]  ;;  %v2085_v9 = vld [vmem:[%s2052_s28 + $0x18] sm:$0xff]  ;;  %p1908_p11 = scmp.ne.s32.totalorder %s2798_s25, %s1907_s29  ;;  %p1914_p0 = scmp.lt.s32.totalorder %s2798_s25, %s1912_s4 }
  0x1a   : > { %vm226_vm4 = vmand %vm194_vm0, %vm210_vm1  ;;  %vm195_vm5 = vcmp.ge.s32.totalorder %v2061_v3, 0  ;;  %vm211_vm6 = vcmp.lt.s32.totalorder %v2061_v3, 32  ;;  %v450_v10 = vadd.s32 32, %v2055_v1  ;;  %vm199_vm9 = vcmp.ge.s32.totalorder %v2082_v8, 0  ;;  %v2092_v11 = vld [vmem:[%s2052_s28 + $0x20] sm:$0xff]  ;;  %v2103_v14 = vld [vmem:[%s2052_s28 + $0x50] sm:$0xff]  ;;  %1704 = vmatpush3.bf16.msra.mxu0 %v1701_v46  ;;  %p1915_p1 = scmp.lt.s32.totalorder %s1913_s5, %s1907_s29 }
  0x1b   : > { %v2072_v4 = vsel %vm226_vm4, 1, %v1971_v0  ;;  %vm225_vm7 = vmand %vm193_vm2, %vm209_vm3  ;;  %vm215_vm10 = vcmp.lt.s32.totalorder %v2082_v8, 32  ;;  %v657_v13 = vadd.s32 64, %v2058_v2  ;;  %v2106_v15 = vld [vmem:[%s2052_s28 + $0x38] sm:$0xff]  ;;  %vm196_vm12 = vcmp.ge.s32.totalorder %v2085_v9, 0  ;;  %v2115_v17 = vld [vmem:[%s2052_s28 + $0x40] sm:$0xff]  ;;  %1706 = vmatprep.subr.bf16.mxu0 %v1705_v50  ;;  %p1909_p12 = pnand %p1908_p11, %p2036_p5 }
  0x1c   : > { %v305_v5 = vsel %vm225_vm7, 1, %v1971_v0  ;;  %vm227_vm8 = vmand %vm195_vm5, %vm211_vm6  ;;  %vm212_vm13 = vcmp.lt.s32.totalorder %v2085_v9, 32  ;;  %vm203_vm14 = vcmp.ge.s32.totalorder %v2103_v14, 0  ;;  %vm219_vm15 = vcmp.lt.s32.totalorder %v2103_v14, 32  ;;  %v2125_v20 = vld [vmem:[%s2052_s28 + $0x70] sm:$0xff]  ;;  %v2128_v21 = vld [vmem:[%s2052_s28 + $0x58] sm:$0xff]  ;;  %p1916_p2 = por %p1915_p1, %p1914_p0 }
  0x1d   : > { %325 = vperm.xlu1 %1803, %v2072_v4   ;;  %322 = vperm.xlu0 %1802, %v305_v5   ;;  %v2077_v6 = vsel %vm227_vm8, 1, %v1971_v0  ;;  %vm231_vm11 = vmand %vm199_vm9, %vm215_vm10  ;;  %vm207_vm2 = vcmp.ge.s32.totalorder %v2125_v20, 0  ;;  %vm223_vm3 = vcmp.lt.s32.totalorder %v2125_v20, 32  ;;  %v2136_v22 = vld [vmem:[%s2052_s28 + $0x60] sm:$0xff]  ;;  %v451_v23 = vadd.s32 32, %v2061_v3  ;;  %v2147_v26 = vld [vmem:[%s2052_s28 + $0x78] sm:$0xff]  ;;  %p1910_p13 = pneg %p1909_p12 }
  0x1e   : > { %v2097_v12 = vsel %vm231_vm11, 1, %v1971_v0  ;;  %vm228_vm0 = vmand %vm196_vm12, %vm212_vm13  ;;  %v452_v25 = vadd.s32 32, %v2085_v9  ;;  %vm197_vm5 = vcmp.ge.s32.totalorder %v2092_v11, 0  ;;  %vm213_vm6 = vcmp.lt.s32.totalorder %v2092_v11, 32  ;;  %v2162_v30 = vld [vmem:[%s2052_s28 + $0x28] sm:$0xff]  ;;  %1708 = vmatpush3.bf16.msra.mxu0 %v1705_v50 }
  0x1f   : > { %vm235_vm1 = vmand %vm203_vm14, %vm219_vm15  ;;  %v308_v18 = vsel %vm228_vm0, 1, %v1971_v0  ;;  %v449_v27 = vadd.s32 32, %v2058_v2  ;;  %v659_v29 = vadd.s32 64, %v2061_v3  ;;  %vm198_vm8 = vcmp.ge.s32.totalorder %v2162_v30, 0  ;;  %v2177_v33 = vld [vmem:[%s2052_s28 + $0x48] sm:$0xff]  ;;  %1710 = vmatprep.subr.bf16.mxu0 %v1709_v54  ;;  %v879_v2 = vld [vmem:[%s2847_s1 + $0x70] sm:$0xff]  ;;  %p1917_p3 = pnand %p1916_p2, %p1910_p13 }
  0x20   : > { %v2120_v19 = vsel %vm235_vm1, 1, %v1971_v0  ;;  %vm239_vm4 = vmand %vm207_vm2, %vm223_vm3  ;;  %vm214_vm9 = vcmp.lt.s32.totalorder %v2162_v30, 32  ;;  %v453_v31 = vadd.s32 32, %v2092_v11  ;;  %vm202_vm11 = vcmp.ge.s32.totalorder %v2177_v33, 0  ;;  %v2210_v45 = vld [vmem:[%s2052_s28 + $0x68] sm:$0xff]  ;;  %s2796_s28 = scalar_lea.hbm %s2849_s3, %s1516_s24 }
  0x21   : > { %1804 = vset.pattern.permute.xlu1 %v1972_v7  ;;  %328 = vperm.xlu0 %1802, %v2077_v6   ;;  %v2142_v24 = vsel %vm239_vm4, 1, %v1971_v0  ;;  %vm229_vm7 = vmand %vm197_vm5, %vm213_vm6  ;;  %vm218_vm12 = vcmp.lt.s32.totalorder %v2177_v33, 32  ;;  %v457_v36 = vadd.s32 32, %v2115_v17  ;;  %v454_v42 = vadd.s32 32, %v2162_v30 }
  0x22   : > { %530 = vperm.xlu1 %1804, %v305_v5   ;;  %v2155_v28 = vsel %vm229_vm7, 1, %v1971_v0  ;;  %vm230_vm10 = vmand %vm198_vm8, %vm214_vm9  ;;  %vm206_vm14 = vcmp.ge.s32.totalorder %v2210_v45, 0  ;;  %vm222_vm15 = vcmp.lt.s32.totalorder %v2210_v45, 32  ;;  %v461_v49 = vadd.s32 32, %v2136_v22  ;;  %1712 = vmatpush3.bf16.msra.mxu0 %v1709_v54 }
  0x23   : > { %v2172_v32 = vsel %vm230_vm10, 1, %v1971_v0  ;;  %vm234_vm13 = vmand %vm202_vm11, %vm218_vm12  ;;  %v661_v53 = vadd.s32 64, %v2092_v11  ;;  %vm200_vm1 = vcmp.ge.s32.totalorder %v2106_v15, 0  ;;  %vm216_vm2 = vcmp.lt.s32.totalorder %v2106_v15, 32  ;;  %1714 = vmatprep.subr.bf16.mxu0 %v1713_v58 }
  0x24   : > { %v2198_v41 = vsel %vm234_vm13, 1, %v1971_v0  ;;  %vm238_vm0 = vmand %vm206_vm14, %vm222_vm15  ;;  %v658_v62 = vadd.s32 64, %v2055_v1  ;;  %vm201_vm4 = vcmp.ge.s32.totalorder %v2115_v17, 0  ;;  %vm217_vm5 = vcmp.lt.s32.totalorder %v2115_v17, 32 }
  0x25   : > { %251 = vperm.xlu0 %1802, %v2085_v9   ;;  %v2232_v55 = vsel %vm238_vm0, 1, %v1971_v0  ;;  %vm232_vm3 = vmand %vm200_vm1, %vm216_vm2  ;;  %vm208_vm7 = vcmp.ge.s32.totalorder %v2147_v26, 0  ;;  %vm224_vm8 = vcmp.lt.s32.totalorder %v2147_v26, 32  ;;  %v458_v37 = vadd.s32 32, %v2177_v33 }
  0x26   : > { %469 = vperm.xlu1 %1804, %v450_v10   ;;  %1716 = vmatpush3.bf16.msra.mxu0 %v1713_v58  ;;  %v2254_v63 = vsel %vm232_vm3, 1, %v1971_v0  ;;  %v662_v10 = vadd.s32 64, %v2162_v30  ;;  %vm233_vm6 = vmand %vm201_vm4, %vm217_vm5  ;;  %v665_v46 = vadd.s32 64, %v2115_v17  ;;  %vm204_vm10 = vcmp.ge.s32.totalorder %v2128_v21, 0 }
  0x27   : > { %1718 = vmatprep.subr.bf16.mxu0 %v1717_v61  ;;  %vm240_vm9 = vmand %vm208_vm7, %vm224_vm8  ;;  %vm220_vm11 = vcmp.lt.s32.totalorder %v2128_v21, 32  ;;  %v2338_v50 = vand.u32 127, %v172_v48  ;;  %v459_v59 = vadd.s32 32, %v2103_v14  ;;  %vm205_vm7 = vcmp.ge.s32.totalorder %v2136_v22, 0 }
  0x28   : > { %v2308_v34 = vsel %vm240_vm9, 1, %v1971_v0  ;;  %vm236_vm12 = vmand %vm204_vm10, %vm220_vm11  ;;  %vm221_vm8 = vcmp.lt.s32.totalorder %v2136_v22, 32 }
  0x29   : > { %254 = vperm.xlu0 %1802, %v2092_v11   ;;  %v456_v11 = vadd.s32 32, %v2106_v15  ;;  %vm190_vm0 = vcmp.eq.s32.totalorder %v2338_v50, 96  ;;  %vm237_vm9 = vmand %vm205_vm7, %vm221_vm8 }
  0x2a   : > { %1805 = vset.pattern.permute.xlu1 %v1971_v0  ;;  %1720 = vmatpush3.bf16.msra.mxu0 %v1717_v61  ;;  %v2359_v60 = vsel %vm190_vm0, 1.0, %v1974_v56 }
  0x2b   : > { %248 = vperm.xlu1 %1805, %v2061_v3   ;;  %v880_v3 = vld [vmem:[%s2847_s1 + $0x78] sm:$0xff] }
  0x2c   : > { %v1721_v1 = vpack.c.bf16 %v880_v3, %v879_v2 }
  0x2d   : > { %340 = vperm.xlu0 %1802, %v2097_v12  }
  0x2e   : > { %1722 = vmatprep.subr.bf16.mxu0 %v1721_v1 }
  0x2f   : > { %1806 = vset.pattern.permute.xlu1 %v1973_v16  ;;  %1724 = vmatpush3.bf16.msra.mxu0 %v1721_v1 }
  0x30   : > { %674 = vperm.xlu1 %1806, %v657_v13   ;;  %v666_v13 = vadd.s32 64, %v2177_v33 }
  0x31   : > { %263 = vperm.xlu0 %1802, %v2106_v15  }
  0x34   : > { %738 = vperm.xlu1 %1806, %v305_v5   ;;  %v455_v5 = vadd.s32 32, %v2082_v8 }
  0x35   : > { %266 = vperm.xlu0 %1802, %v2115_v17   ;;  %v316_v17 = vsel %vm236_vm12, 1, %v1971_v0 }
  0x38   : > { %1807 = vset.pattern.permute.xlu1 %v1971_v0 }
  0x39   : > { %331 = vperm.xlu1 %1807, %v308_v18   ;;  %352 = vperm.xlu0 %1802, %v2120_v19  }
  0x3d   : > { %1808 = vset.pattern.permute.xlu1 %v1973_v16  ;;  %275 = vperm.xlu0 %1802, %v2128_v21  }
  0x3e   : > { %741 = vperm.xlu1 %1808, %v2072_v4  }
  0x41   : > { %278 = vperm.xlu0 %1802, %v2136_v22  }
  0x42   : > { %1809 = vset.pattern.permute.xlu1 %v1972_v7 }
  0x43   : > { %472 = vperm.xlu1 %1809, %v451_v23  }
  0x45   : > { %364 = vperm.xlu0 %1802, %v2142_v24  }
  0x47   : > { %475 = vperm.xlu1 %1809, %v452_v25  }
  0x49   : > { %287 = vperm.xlu0 %1802, %v2147_v26  }
  0x4b   : > { %539 = vperm.xlu1 %1809, %v308_v18  }
  0x4d   : > { %1837 = vset.pattern.permute.xlu0 %v1972_v7 }
  0x4e   : > { %466 = vperm.xlu0 %1837, %v449_v27  }
  0x4f   : > { %1810 = vset.pattern.permute.xlu1 %v1971_v0 }
  0x50   : > { %334 = vperm.xlu1 %1810, %v2155_v28  }
  0x52   : > { %533 = vperm.xlu0 %1837, %v2072_v4   ;;  %v660_v4 = vadd.s32 64, %v2085_v9  ;;  %v313_v9 = vsel %vm233_vm6, 1, %v1971_v0 }
  0x54   : > { %1811 = vset.pattern.permute.xlu1 %v1973_v16 }
  0x55   : > { %680 = vperm.xlu1 %1811, %v659_v29  }
  0x56   : > { %536 = vperm.xlu0 %1837, %v2077_v6  }
  0x59   : > { %1812 = vset.pattern.permute.xlu1 %v1971_v0 }
  0x5a   : > { %257 = vperm.xlu1 %1812, %v2162_v30   ;;  %478 = vperm.xlu0 %1837, %v453_v31  }
  0x5e   : > { %337 = vperm.xlu1 %1812, %v2172_v32   ;;  %545 = vperm.xlu0 %1837, %v2172_v32  }
  0x62   : > { %1813 = vset.pattern.permute.xlu1 %v1973_v16  ;;  %548 = vperm.xlu0 %1837, %v2097_v12  }
  0x63   : > { %747 = vperm.xlu1 %1813, %v308_v18   ;;  %v663_v18 = vadd.s32 64, %v2082_v8 }
  0x66   : > { %490 = vperm.xlu0 %1837, %v457_v36  }
  0x67   : > { %1814 = vset.pattern.permute.xlu1 %v1972_v7 }
  0x68   : > { %542 = vperm.xlu1 %1814, %v2155_v28  }
  0x6a   : > { %557 = vperm.xlu0 %1837, %v2198_v41  }
  0x6c   : > { %481 = vperm.xlu1 %1814, %v454_v42  }
  0x6e   : > { %560 = vperm.xlu0 %1837, %v2120_v19  }
  0x70   : > { %1815 = vset.pattern.permute.xlu1 %v1971_v0 }
  0x71   : > { %260 = vperm.xlu1 %1815, %v2082_v8  }
  0x72   : > { %502 = vperm.xlu0 %1837, %v461_v49  }
  0x75   : > { %1816 = vset.pattern.permute.xlu1 %v1973_v16 }
  0x76   : > { %686 = vperm.xlu1 %1816, %v661_v53   ;;  %569 = vperm.xlu0 %1837, %v2232_v55  }
  0x7a   : > { %750 = vperm.xlu1 %1816, %v2155_v28   ;;  %572 = vperm.xlu0 %1837, %v2142_v24   ;;  %v670_v28 = vadd.s32 64, %v2210_v45 }
  0x7e   : > { %1817 = vset.pattern.permute.xlu1 %v1971_v0  ;;  %1841 = vset.pattern.permute.xlu0 %v1973_v16 }
  0x7f   : > { %343 = vperm.xlu1 %1817, %v2254_v63   ;;  %677 = vperm.xlu0 %1841, %v658_v62  }
  0x83   : > { %1818 = vset.pattern.permute.xlu1 %v1973_v16  ;;  %744 = vperm.xlu0 %1841, %v2077_v6   ;;  %v664_v6 = vadd.s32 64, %v2106_v15 }
  0x84   : > { %753 = vperm.xlu1 %1818, %v2172_v32  }
  0x87   : > { %683 = vperm.xlu0 %1841, %v660_v4  }
  0x88   : > { %1819 = vset.pattern.permute.xlu1 %v1972_v7 }
  0x89   : > { %484 = vperm.xlu1 %1819, %v455_v5  }
  0x8b   : > { %689 = vperm.xlu0 %1841, %v662_v10  }
  0x8d   : > { %487 = vperm.xlu1 %1819, %v456_v11  }
  0x8f   : > { %756 = vperm.xlu0 %1841, %v2097_v12   ;;  %v668_v12 = vadd.s32 64, %v2128_v21 }
  0x91   : > { %551 = vperm.xlu1 %1819, %v2254_v63  }
  0x93   : > { %695 = vperm.xlu0 %1841, %v664_v6  }
  0x95   : > { %1820 = vset.pattern.permute.xlu1 %v1971_v0 }
  0x96   : > { %346 = vperm.xlu1 %1820, %v313_v9  }
  0x97   : > { %701 = vperm.xlu0 %1841, %v666_v13  }
  0x98   : > { %v2282_v23 = vpop.permute.xlu1 %245  ;;  %v243_v25 = vpop.permute.xlu0 %242 }
  0x99   : > { %vm289_vm13 = vcmp.eq.s32.totalorder %v2338_v50, %v243_v25  ;;  %v667_v25 = vadd.s32 64, %v2103_v14 }
  0x9a   : > { %1821 = vset.pattern.permute.xlu1 %v1973_v16 }
  0x9b   : > { %692 = vperm.xlu1 %1821, %v663_v18   ;;  %768 = vperm.xlu0 %1841, %v2120_v19   ;;  %v671_v19 = vadd.s32 64, %v2125_v20 }
  0x9c   : > { %v2287_v15 = vpop.permute.xlu1 %325  ;;  %v323_v27 = vpop.permute.xlu0 %322 }
  0x9d   : > { %vm369_vm14 = vcmp.eq.s32.totalorder %v323_v27, 1  ;;  %vm370_vm10 = vcmp.eq.s32.totalorder %v2287_v15, 1 }
  0x9e   : > { %vm385_vm15 = vmand %vm289_vm13, %vm369_vm14  ;;  %vm290_vm13 = vcmp.eq.s32.totalorder %v2338_v50, %v2282_v23 }
  0x9f   : > { %1822 = vset.pattern.permute.xlu1 %v1971_v0  ;;  %707 = vperm.xlu0 %1841, %v668_v12   ;;  %v1463_v57 = vsel %vm385_vm15, 1.0, %v1974_v56  ;;  %vm386_vm15 = vmand %vm290_vm13, %vm370_vm10 }
  0xa0   : > { %269 = vperm.xlu1 %1822, %v2177_v33   ;;  %v2292_v8 = vpop.permute.xlu0 %328  ;;  %v433_v62 = vadd.f32 %v1463_v57, %v2359_v60 }
  0xa1   : > { %v2294_v29 = vpop.permute.xlu1 %530  ;;  %vm371_vm11 = vcmp.eq.s32.totalorder %v2292_v8, 1 }
  0xa2   : > { %vm577_vm3 = vcmp.eq.s32.totalorder %v2294_v29, 1 }
  0xa3   : > { %713 = vperm.xlu0 %1841, %v670_v28  }
  0xa4   : > { %349 = vperm.xlu1 %1822, %v2198_v41   ;;  %v2300_v30 = vpop.permute.xlu0 %251 }
  0xa5   : > { %v2302_v31 = vpop.permute.xlu1 %469 }
  0xa6   : > { %vm514_vm0 = vcmp.eq.s32.totalorder %v2338_v50, %v2302_v31 }
  0xa7   : > { %716 = vperm.xlu0 %1841, %v671_v19  }
  0xa8   : > { %1823 = vset.pattern.permute.xlu1 %v1973_v16  ;;  %v2305_v32 = vpop.permute.xlu0 %254 }
  0xa9   : > { %759 = vperm.xlu1 %1823, %v2254_v63   ;;  %v460_v63 = vadd.s32 32, %v2128_v21  ;;  %vm293_vm7 = vcmp.eq.s32.totalorder %v2338_v50, %v2305_v32 }
  0xaa   : > { %v2311_v35 = vpop.permute.xlu1 %248 }
  0xab   : > { %783 = vperm.xlu0 %1841, %v2308_v34   ;;  %vm291_vm12 = vcmp.eq.s32.totalorder %v2338_v50, %v2311_v35  ;;  %v669_v35 = vadd.s32 64, %v2136_v22 }
  0xac   : > { %v2314_v36 = vpop.permute.xlu0 %340 }
  0xad   : > { %1824 = vset.pattern.permute.xlu1 %v1972_v7 }
  0xae   : > { %554 = vperm.xlu1 %1824, %v313_v9  }
  0xaf   : > { %v675_v38 = vpop.permute.xlu1 %674 }
  0xb0   : > { %v2318_v39 = vpop.permute.xlu0 %263  ;;  %vm721_vm2 = vcmp.eq.s32.totalorder %v2338_v50, %v675_v38 }
  0xb2   : > { %493 = vperm.xlu1 %1824, %v458_v37  }
  0xb3   : > { %v739_v40 = vpop.permute.xlu1 %738 }
  0xb4   : > { %v2320_v42 = vpop.permute.xlu0 %266  ;;  %vm785_vm1 = vcmp.eq.s32.totalorder %v739_v40, 1 }
  0xb5   : > { %vm801_vm5 = vmand %vm721_vm2, %vm785_vm1  ;;  %vm292_vm1 = vcmp.eq.s32.totalorder %v2338_v50, %v2300_v30 }
  0xb6   : > { %1825 = vset.pattern.permute.xlu1 %v1971_v0  ;;  %v1495_v4 = vsel %vm801_vm5, 1.0, %v1974_v56  ;;  %vm387_vm2 = vmand %vm291_vm12, %vm371_vm11 }
  0xb7   : > { %272 = vperm.xlu1 %1825, %v2103_v14   ;;  %v1465_v15 = vsel %vm387_vm2, 1.0, %v1974_v56 }
  0xb8   : > { %v2324_v43 = vpop.permute.xlu1 %331  ;;  %v2326_v44 = vpop.permute.xlu0 %352  ;;  %v435_v22 = vadd.f32 %v1465_v15, %v2359_v60 }
  0xbb   : > { %1826 = vset.pattern.permute.xlu1 %v1973_v16 }
  0xbc   : > { %698 = vperm.xlu1 %1826, %v665_v46   ;;  %v2330_v33 = vpop.permute.xlu0 %275  ;;  %v462_v46 = vadd.s32 32, %v2210_v45 }
  0xbd   : > { %v2334_v47 = vpop.permute.xlu1 %741 }
  0xc0   : > { %762 = vperm.xlu1 %1826, %v313_v9   ;;  %v2336_v49 = vpop.permute.xlu0 %278  ;;  %v2380_v9 = vsel %vm237_vm9, 1, %v1971_v0 }
  0xc2   : > { %v2340_v51 = vpop.permute.xlu1 %472 }
  0xc3   : > { %vm515_vm9 = vcmp.eq.s32.totalorder %v2338_v50, %v2340_v51 }
  0xc4   : > { %1827 = vset.pattern.permute.xlu1 %v1971_v0  ;;  %v2345_v52 = vpop.permute.xlu0 %364 }
  0xc5   : > { %355 = vperm.xlu1 %1827, %v316_v17  }
  0xc6   : > { %v2347_v53 = vpop.permute.xlu1 %475 }
  0xc7   : > { %vm516_vm11 = vcmp.eq.s32.totalorder %v2338_v50, %v2347_v53 }
  0xc8   : > { %v2349_v54 = vpop.permute.xlu0 %287 }
  0xc9   : > { %1828 = vset.pattern.permute.xlu1 %v1973_v16 }
  0xca   : > { %765 = vperm.xlu1 %1828, %v2198_v41   ;;  %v2355_v58 = vpop.permute.xlu1 %539 }
  0xcd   : > { %v467_v61 = vpop.permute.xlu0 %466 }
  0xce   : > { %vm513_vm4 = vcmp.eq.s32.totalorder %v2338_v50, %v467_v61  ;;  %1829 = vset.pattern.permute.xlu1 %v1972_v7 }
  0xcf   : > { %vm593_vm6 = vmand %vm513_vm4, %vm577_vm3  ;;  %496 = vperm.xlu1 %1829, %v459_v59   ;;  %v2366_v41 = vpop.permute.xlu1 %334  ;;  %vm372_vm3 = vcmp.eq.s32.totalorder %v2324_v43, 1 }
  0xd0   : > { %v1479_v2 = vsel %vm593_vm6, 1.0, %v1974_v56  ;;  %vm580_vm6 = vcmp.eq.s32.totalorder %v2355_v58, 1  ;;  %vm2437_vm8 = vmand %vm292_vm1, %vm372_vm3  ;;  %vm373_vm10 = vcmp.eq.s32.totalorder %v2366_v41, 1 }
  0xd1   : > { %v534_v3 = vpop.permute.xlu0 %533  ;;  %v641_v1 = vadd.f32 %v1479_v2, %v433_v62  ;;  %vm2455_vm13 = vmand %vm516_vm11, %vm580_vm6  ;;  %v1466_v32 = vsel %vm2437_vm8, 1.0, %v1974_v56 }
  0xd2   : > { %vm578_vm14 = vcmp.eq.s32.totalorder %v534_v3, 1  ;;  %vm2465_vm1 = vmand %vm293_vm7, %vm373_vm10 }
  0xd3   : > { %499 = vperm.xlu1 %1829, %v460_v63   ;;  %v849_v5 = vadd.f32 %v1495_v4, %v641_v1  ;;  %vm594_vm4 = vmand %vm514_vm0, %vm578_vm14  ;;  %vm786_vm0 = vcmp.eq.s32.totalorder %v2334_v47, 1  ;;  %v1467_v3 = vsel %vm2465_vm1, 1.0, %v1974_v56  ;;  %v1482_v4 = vsel %vm2455_vm13, 1.0, %v1974_v56 }
  0xd4   : > { %v2373_v10 = vpop.permute.xlu1 %680  ;;  %v1480_v8 = vsel %vm594_vm4, 1.0, %v1974_v56 }
  0xd5   : > { %1613 = vmatprep.mubr.f32.mxu0 %v849_v5  ;;  %v537_v11 = vpop.permute.xlu0 %536  ;;  %vm723_vm6 = vcmp.eq.s32.totalorder %v2338_v50, %v2373_v10 }
  0xd6   : > { %vm579_vm5 = vcmp.eq.s32.totalorder %v537_v11, 1  ;;  %v436_v11 = vadd.f32 %v1466_v32, %v2359_v60  ;;  %v672_v32 = vadd.s32 64, %v2147_v26 }
  0xd7   : > { %563 = vperm.xlu1 %1829, %v316_v17   ;;  %vm595_vm12 = vmand %vm515_vm9, %vm579_vm5 }
  0xd8   : > { %v1481_v61 = vsel %vm595_vm12, 1.0, %v1974_v56 }
  0xd9   : > { %v2375_v6 = vpop.permute.xlu1 %257  ;;  %v2377_v21 = vpop.permute.xlu0 %478  ;;  %v643_v1 = vadd.f32 %v1481_v61, %v435_v22 }
  0xda   : > { %vm517_vm2 = vcmp.eq.s32.totalorder %v2338_v50, %v2377_v21  ;;  %vm294_vm4 = vcmp.eq.s32.totalorder %v2338_v50, %v2375_v6 }
  0xdb   : > { %1830 = vset.pattern.permute.xlu1 %v1971_v0 }
  0xdc   : > { %358 = vperm.xlu1 %1830, %v2380_v9  }
  0xdd   : > { %v2384_v13 = vpop.permute.xlu1 %337  ;;  %v2386_v18 = vpop.permute.xlu0 %545 }
  0xde   : > { %vm374_vm14 = vcmp.eq.s32.totalorder %v2384_v13, 1  ;;  %vm582_vm10 = vcmp.eq.s32.totalorder %v2386_v18, 1  ;;  %v437_v13 = vadd.f32 %v1467_v3, %v2359_v60 }
  0xdf   : > { %vm2482_vm7 = vmand %vm294_vm4, %vm374_vm14 }
  0xe0   : > { %1831 = vset.pattern.permute.xlu1 %v1973_v16 }
  0xe1   : > { %704 = vperm.xlu1 %1831, %v667_v25   ;;  %v2390_v12 = vpop.permute.xlu0 %548  ;;  %v1468_v25 = vsel %vm2482_vm7, 1.0, %v1974_v56  ;;  %vm375_vm7 = vcmp.eq.s32.totalorder %v2314_v36, 1 }
  0xe2   : > { %v2392_v27 = vpop.permute.xlu1 %747 }
  0xe3   : > { %vm788_vm13 = vcmp.eq.s32.totalorder %v2392_v27, 1 }
  0xe5   : > { %1832 = vset.pattern.permute.xlu1 %v1971_v0  ;;  %v2395_v28 = vpop.permute.xlu0 %490 }
  0xe6   : > { %281 = vperm.xlu1 %1832, %v2210_v45   ;;  %v1464_v45 = vsel %vm386_vm15, 1.0, %v1974_v56 }
  0xe7   : > { %v2398_v29 = vpop.permute.xlu1 %542  ;;  %v434_v43 = vadd.f32 %v1464_v45, %v2359_v60 }
  0xe8   : > { %vm581_vm3 = vcmp.eq.s32.totalorder %v2398_v29, 1  ;;  %v644_v29 = vadd.f32 %v1482_v4, %v436_v11  ;;  %v1045_v4 = vld [vmem:[%s2848_s2 + $0x18] sm:$0xff] }
  0xe9   : > { %v2400_v19 = vpop.permute.xlu0 %557  ;;  %v642_v58 = vadd.f32 %v1480_v8, %v434_v43  ;;  %vm597_vm8 = vmand %vm517_vm2, %vm581_vm3  ;;  %v463_v43 = vadd.s32 32, %v2125_v20 }
  0xea   : > { %361 = vperm.xlu1 %1832, %v2232_v55   ;;  %v1483_v6 = vsel %vm597_vm8, 1.0, %v1974_v56 }
  0xeb   : > { %v2403_v14 = vpop.permute.xlu1 %481 }
  0xec   : > { %vm518_vm11 = vcmp.eq.s32.totalorder %v2338_v50, %v2403_v14 }
  0xed   : > { %v2405_v37 = vpop.permute.xlu0 %560  ;;  %vm598_vm1 = vmand %vm518_vm11, %vm582_vm10  ;;  %vm583_vm10 = vcmp.eq.s32.totalorder %v2390_v12, 1 }
  0xee   : > { %1833 = vset.pattern.permute.xlu1 %v1973_v16 }
  0xef   : > { %771 = vperm.xlu1 %1833, %v316_v17  }
  0xf0   : > { %v2408_v38 = vpop.permute.xlu1 %260 }
  0xf1   : > { %v2410_v40 = vpop.permute.xlu0 %502 }
  0xf3   : > { %1834 = vset.pattern.permute.xlu1 %v1972_v7 }
  0xf4   : > { %566 = vperm.xlu1 %1834, %v2380_v9  }
  0xf5   : > { %v2415_v48 = vpop.permute.xlu1 %686  ;;  %v2417_v57 = vpop.permute.xlu0 %569 }
  0xf6   : > { %vm725_vm14 = vcmp.eq.s32.totalorder %v2338_v50, %v2415_v48 }
  0xf8   : > { %505 = vperm.xlu1 %1834, %v462_v46   ;;  %v645_v46 = vadd.f32 %v1483_v6, %v437_v13  ;;  %v1046_v6 = vld [vmem:[%s2848_s2 + $0x20] sm:$0xff] }
  0xf9   : > { %v751_v17 = vpop.permute.xlu1 %750  ;;  %v2425_v59 = vpop.permute.xlu0 %572 }
  0xfa   : > { %vm789_vm9 = vcmp.eq.s32.totalorder %v751_v17, 1  ;;  %v438_v17 = vadd.f32 %v1468_v25, %v2359_v60 }
  0xfc   : > { %1835 = vset.pattern.permute.xlu1 %v1971_v0 }
  0xfd   : > { %284 = vperm.xlu1 %1835, %v2125_v20  }
  0xfe   : > { %v2449_v30 = vpop.permute.xlu1 %343  ;;  %v678_v31 = vpop.permute.xlu0 %677 }
  0xff   : > { %vm722_vm15 = vcmp.eq.s32.totalorder %v2338_v50, %v678_v31 }
 0x100   : > { %vm802_vm5 = vmand %vm722_vm15, %vm786_vm0 }
 0x101   : > { %1836 = vset.pattern.permute.xlu1 %v1973_v16  ;;  %v1496_v62 = vsel %vm802_vm5, 1.0, %v1974_v56  ;;  %vm805_vm0 = vmand %vm725_vm14, %vm789_vm9  ;;  %vm295_vm9 = vcmp.eq.s32.totalorder %v2338_v50, %v2408_v38 }
 0x102   : > { %710 = vperm.xlu1 %1836, %v669_v35   ;;  %v745_v41 = vpop.permute.xlu0 %744  ;;  %v850_v63 = vadd.f32 %v1496_v62, %v642_v58  ;;  %v1499_v14 = vsel %vm805_vm0, 1.0, %v1974_v56  ;;  %vm391_vm11 = vmand %vm295_vm9, %vm375_vm7  ;;  %vm297_vm9 = vcmp.eq.s32.totalorder %v2338_v50, %v2320_v42  ;;  %v1044_v42 = vld [vmem:[%s2848_s2 + $0x10] sm:$0xff] }
 0x103   : > { %vm787_vm12 = vcmp.eq.s32.totalorder %v745_v41, 1  ;;  %v754_v2 = vpop.permute.xlu1 %753  ;;  %v853_v27 = vadd.f32 %v1499_v14, %v645_v46  ;;  %v1469_v36 = vsel %vm391_vm11, 1.0, %v1974_v56  ;;  %v1042_v41 = vld [vmem:[%s2848_s2] sm:$0xff]  ;;  %v1729_v11 = vpack.c.bf16 %v1045_v4, %v1044_v42  ;;  %v1048_v14 = vld [vmem:[%s2848_s2 + $0x30] sm:$0xff] }
 0x104   : > { %vm803_vm15 = vmand %vm723_vm6, %vm787_vm12  ;;  %1614 = vmatmul.mubr.f32.vlgmr.msra.gmra.mrb[0].mxu0 %v850_v63  ;;  %vm790_vm4 = vcmp.eq.s32.totalorder %v754_v2, 1  ;;  %v439_v20 = vadd.f32 %v1469_v36, %v2359_v60  ;;  %v1043_v63 = vld [vmem:[%s2848_s2 + $0x8] sm:$0xff] }
 0x105   : > { %v1497_v5 = vsel %vm803_vm15, 1.0, %v1974_v56 }
 0x106   : > { %v851_v21 = vadd.f32 %v1497_v5, %v643_v1  ;;  %774 = vperm.xlu1 %1836, %v2380_v9   ;;  %v684_v10 = vpop.permute.xlu0 %683  ;;  %v1484_v9 = vsel %vm598_vm1, 1.0, %v1974_v56  ;;  %vm296_vm1 = vcmp.eq.s32.totalorder %v2338_v50, %v2318_v39  ;;  %v1725_v1 = vpack.c.bf16 %v1043_v63, %v1042_v41 }
 0x107   : > { %vm724_vm2 = vcmp.eq.s32.totalorder %v2338_v50, %v684_v10  ;;  %v646_v15 = vadd.f32 %v1484_v9, %v438_v17  ;;  %v1050_v9 = vld [vmem:[%s2848_s2 + $0x40] sm:$0xff] }
 0x108   : > { %vm804_vm3 = vmand %vm724_vm2, %vm788_vm13  ;;  %v485_v18 = vpop.permute.xlu1 %484  ;;  %1616 = vmatprep.mubr.f32.mxu0 %v851_v21  ;;  %vm376_vm13 = vcmp.eq.s32.totalorder %v2449_v30, 1  ;;  %v1047_v21 = vld [vmem:[%s2848_s2 + $0x28] sm:$0xff]  ;;  %1726 = vmatprep.subr.bf16.mxu1 %v1725_v1 }
 0x109   : > { %v1498_v48 = vsel %vm804_vm3, 1.0, %v1974_v56  ;;  %vm519_vm8 = vcmp.eq.s32.totalorder %v2338_v50, %v485_v18  ;;  %vm392_vm3 = vmand %vm296_vm1, %vm376_vm13  ;;  %1728 = vmatpush3.bf16.msra.mxu1 %v1725_v1  ;;  %v1733_v13 = vpack.c.bf16 %v1047_v21, %v1046_v6  ;;  %v1049_v18 = vld [vmem:[%s2848_s2 + $0x38] sm:$0xff] }
 0x10a   : > { %v852_v45 = vadd.f32 %v1498_v48, %v644_v29  ;;  %1838 = vset.pattern.permute.xlu1 %v1971_v0  ;;  %v690_v23 = vpop.permute.xlu0 %689  ;;  %vm599_vm12 = vmand %vm519_vm8, %vm583_vm10  ;;  %v1470_v39 = vsel %vm392_vm3, 1.0, %v1974_v56  ;;  %1730 = vmatprep.subr.bf16.mxu1 %v1729_v11  ;;  %v1737_v46 = vpack.c.bf16 %v1049_v18, %v1048_v14  ;;  %v1051_v48 = vld [vmem:[%s2848_s2 + $0x48] sm:$0xff]  ;;  %vm586_vm3 = vcmp.eq.s32.totalorder %v2400_v19, 1 }
 0x10b   : > { %vm726_vm5 = vcmp.eq.s32.totalorder %v2338_v50, %v690_v23  ;;  %367 = vperm.xlu1 %1838, %v2308_v34   ;;  %v1485_v22 = vsel %vm599_vm12, 1.0, %v1974_v56  ;;  %vm521_vm12 = vcmp.eq.s32.totalorder %v2338_v50, %v2395_v28  ;;  %v1052_v23 = vld [vmem:[%s2848_s2 + $0x50] sm:$0xff] }
 0x10c   : > { %vm806_vm6 = vmand %vm726_vm5, %vm790_vm4  ;;  %v488_v8 = vpop.permute.xlu1 %487  ;;  %1617 = vmatmul.mubr.f32.gmra.mrb[2].mxu0 %v852_v45  ;;  %v647_v38 = vadd.f32 %v1485_v22, %v439_v20  ;;  %v1741_v45 = vpack.c.bf16 %v1051_v48, %v1050_v9 }
 0x10d   : > { %v1500_v31 = vsel %vm806_vm6, 1.0, %v1974_v56  ;;  %1619 = vmatprep.mubr.f32.mxu0 %v853_v27  ;;  %vm520_vm4 = vcmp.eq.s32.totalorder %v2338_v50, %v488_v8  ;;  %1732 = vmatpush3.bf16.msra.mxu1 %v1729_v11  ;;  %v1053_v27 = vld [vmem:[%s2848_s2 + $0x58] sm:$0xff] }
 0x10e   : > { %v854_v35 = vadd.f32 %v1500_v31, %v646_v15  ;;  %v757_v53 = vpop.permute.xlu0 %756  ;;  %1734 = vmatprep.subr.bf16.mxu1 %v1733_v13  ;;  %v1745_v8 = vpack.c.bf16 %v1053_v27, %v1052_v23  ;;  %v1054_v31 = vld [vmem:[%s2848_s2 + $0x60] sm:$0xff] }
 0x10f   : > { %1839 = vset.pattern.permute.xlu1 %v1973_v16  ;;  %vm791_vm14 = vcmp.eq.s32.totalorder %v757_v53, 1 }
 0x110   : > { %777 = vperm.xlu1 %1839, %v2232_v55   ;;  %v552_v0 = vpop.permute.xlu1 %551  ;;  %1620 = vmatmul.mubr.f32.gmra.mrb[4].mxu0 %v854_v35  ;;  %v464_v55 = vadd.s32 32, %v2147_v26  ;;  %v1055_v35 = vld [vmem:[%s2848_s2 + $0x68] sm:$0xff] }
 0x111   : > { %vm584_vm2 = vcmp.eq.s32.totalorder %v552_v0, 1  ;;  %1736 = vmatpush3.bf16.msra.mxu1 %v1733_v13 }
 0x112   : > { %vm600_vm5 = vmand %vm520_vm4, %vm584_vm2  ;;  %v696_v47 = vpop.permute.xlu0 %695  ;;  %1738 = vmatprep.subr.bf16.mxu1 %v1737_v46 }
 0x113   : > { %v1486_v30 = vsel %vm600_vm5, 1.0, %v1974_v56  ;;  %vm728_vm7 = vcmp.eq.s32.totalorder %v2338_v50, %v696_v47 }
 0x114   : > { %1840 = vset.pattern.permute.xlu1 %v1972_v7 }
 0x115   : > { %508 = vperm.xlu1 %1840, %v463_v43   ;;  %v347_v51 = vpop.permute.xlu1 %346  ;;  %1740 = vmatpush3.bf16.msra.mxu1 %v1737_v46  ;;  %v1749_v43 = vpack.c.bf16 %v1055_v35, %v1054_v31 }
 0x116   : > { %vm377_vm6 = vcmp.eq.s32.totalorder %v347_v51, 1  ;;  %1742 = vmatprep.subr.bf16.mxu1 %v1741_v45  ;;  %v702_v36 = vpop.permute.xlu0 %701 }
 0x117   : > { %vm393_vm10 = vmand %vm297_vm9, %vm377_vm6 }
 0x118   : > { %v1471_v2 = vsel %vm393_vm10, 1.0, %v1974_v56  ;;  %vm730_vm10 = vcmp.eq.s32.totalorder %v2338_v50, %v702_v36 }
 0x119   : > { %511 = vperm.xlu1 %1840, %v464_v55   ;;  %v441_v28 = vadd.f32 %v1471_v2, %v2359_v60  ;;  %1744 = vmatpush3.bf16.msra.mxu1 %v1741_v45 }
 0x11a   : > { %v693_v12 = vpop.permute.xlu1 %692  ;;  %1746 = vmatprep.subr.bf16.mxu1 %v1745_v8 }
 0x11b   : > { %vm727_vm15 = vcmp.eq.s32.totalorder %v2338_v50, %v693_v12 }
 0x11c   : > { %vm807_vm0 = vmand %vm727_vm15, %vm791_vm14 }
 0x11d   : > { %v1501_v7 = vsel %vm807_vm0, 1.0, %v1974_v56  ;;  %575 = vperm.xlu1 %1840, %v2308_v34   ;;  %1748 = vmatpush3.bf16.msra.mxu1 %v1745_v8 }
 0x11e   : > { %v855_v58 = vadd.f32 %v1501_v7, %v647_v38  ;;  %1750 = vmatprep.subr.bf16.mxu1 %v1749_v43 }
 0x11f   : > { %v2546_v61 = vpop.permute.xlu1 %269 }
 0x120   : > { %1622 = vmatprep.mubr.f32.mxu0 %v855_v58  ;;  %vm298_vm4 = vcmp.eq.s32.totalorder %v2338_v50, %v2546_v61 }
 0x121   : > { %1842 = vset.pattern.permute.xlu1 %v1973_v16  ;;  %v440_v16 = vadd.f32 %v1470_v39, %v2359_v60  ;;  %1752 = vmatpush3.bf16.msra.mxu1 %v1749_v43 }
 0x122   : > { %780 = vperm.xlu1 %1842, %v2142_v24  }
 0x123   : > { %v2552_v34 = vpop.permute.xlu1 %349  ;;  %v648_v26 = vadd.f32 %v1486_v30, %v440_v16  ;;  %v1056_v16 = vld [vmem:[%s2848_s2 + $0x70] sm:$0xff] }
 0x124   : > { %vm378_vm0 = vcmp.eq.s32.totalorder %v2552_v34, 1 }
 0x125   : > { %vm394_vm6 = vmand %vm298_vm4, %vm378_vm0 }
 0x126   : > { %719 = vperm.xlu1 %1842, %v672_v32   ;;  %v1472_v22 = vsel %vm394_vm6, 1.0, %v1974_v56 }
 0x127   : > { %v442_v20 = vadd.f32 %v1472_v22, %v2359_v60 }
 0x128   : > { %v760_v24 = vpop.permute.xlu1 %759 }
 0x129   : > { %vm792_vm8 = vcmp.eq.s32.totalorder %v760_v24, 1  ;;  %v1057_v24 = vld [vmem:[%s2848_s2 + $0x78] sm:$0xff] }
 0x12a   : > { %vm808_vm11 = vmand %vm728_vm7, %vm792_vm8  ;;  %vm379_vm8 = vcmp.eq.s32.totalorder %v2326_v44, 1 }
 0x12b   : > { %v1502_v62 = vsel %vm808_vm11, 1.0, %v1974_v56 }
 0x12c   : > { %v856_v3 = vadd.f32 %v1502_v62, %v648_v26  ;;  %v769_v62 = vpop.permute.xlu0 %768 }
 0x12d   : > { %v555_v5 = vpop.permute.xlu1 %554 }
 0x12e   : > { %vm585_vm14 = vcmp.eq.s32.totalorder %v555_v5, 1  ;;  %1623 = vmatmul.mubr.f32.gmra.mrb[6].mxu0 %v856_v3 }
 0x12f   : > { %vm601_vm15 = vmand %vm521_vm12, %vm585_vm14 }
 0x130   : > { %v1487_v10 = vsel %vm601_vm15, 1.0, %v1974_v56  ;;  %vm587_vm15 = vcmp.eq.s32.totalorder %v2405_v37, 1  ;;  %v1753_v37 = vpack.c.bf16 %v1057_v24, %v1056_v16  ;;  %v708_v1 = vpop.permute.xlu0 %707 }
 0x131   : > { %v649_v25 = vadd.f32 %v1487_v10, %v441_v28  ;;  %v494_v29 = vpop.permute.xlu1 %493 }
 0x132   : > { %vm522_vm5 = vcmp.eq.s32.totalorder %v2338_v50, %v494_v29  ;;  %1754 = vmatprep.subr.bf16.mxu1 %v1753_v37 }
 0x133   : > { %vm602_vm7 = vmand %vm522_vm5, %vm586_vm3  ;;  %1756 = vmatpush3.bf16.msra.mxu1 %v1753_v37  ;;  %vm300_vm5 = vcmp.eq.s32.totalorder %v2338_v50, %v2330_v33 }
 0x134   : > { %v1488_v19 = vsel %vm602_vm7, 1.0, %v1974_v56 }
 0x135   : > { %v650_v38 = vadd.f32 %v1488_v19, %v442_v20 }
 0x136   : > { %v273_v17 = vpop.permute.xlu1 %272 }
 0x137   : > { %vm299_vm9 = vcmp.eq.s32.totalorder %v2338_v50, %v273_v17 }
 0x138   : > { %vm395_vm11 = vmand %vm299_vm9, %vm379_vm8 }
 0x139   : > { %v1473_v58 = vsel %vm395_vm11, 1.0, %v1974_v56  ;;  %vm732_vm11 = vcmp.eq.s32.totalorder %v2338_v50, %v708_v1 }
 0x13a   : > { %v443_v44 = vadd.f32 %v1473_v58, %v2359_v60 }
 0x13b   : > { %v699_v15 = vpop.permute.xlu1 %698 }
 0x13c   : > { %vm729_vm1 = vcmp.eq.s32.totalorder %v2338_v50, %v699_v15  ;;  %v714_v15 = vpop.permute.xlu0 %713 }
 0x13f   : > { %v763_v0 = vpop.permute.xlu1 %762 }
 0x140   : > { %vm793_vm13 = vcmp.eq.s32.totalorder %v763_v0, 1  ;;  %v717_v22 = vpop.permute.xlu0 %716 }
 0x141   : > { %vm809_vm2 = vmand %vm729_vm1, %vm793_vm13  ;;  %vm795_vm13 = vcmp.eq.s32.totalorder %v769_v62, 1 }
 0x142   : > { %v1503_v51 = vsel %vm809_vm2, 1.0, %v1974_v56 }
 0x143   : > { %v857_v55 = vadd.f32 %v1503_v51, %v649_v25 }
 0x144   : > { %v356_v53 = vpop.permute.xlu1 %355  ;;  %v784_v20 = vpop.permute.xlu0 %783 }
 0x145   : > { %1625 = vmatprep.mubr.f32.mxu0 %v857_v55  ;;  %vm380_vm4 = vcmp.eq.s32.totalorder %v356_v53, 1 }
 0x146   : > { %vm396_vm7 = vmand %vm300_vm5, %vm380_vm4 }
 0x147   : > { %v1474_v4 = vsel %vm396_vm7, 1.0, %v1974_v56 }
 0x148   : > { %v444_v11 = vadd.f32 %v1474_v4, %v2359_v60 }
 0x149   : > { %v766_v12 = vpop.permute.xlu1 %765 }
 0x14a   : > { %vm794_vm12 = vcmp.eq.s32.totalorder %v766_v12, 1 }
 0x14b   : > { %vm810_vm14 = vmand %vm730_vm10, %vm794_vm12  ;;  %vm301_vm12 = vcmp.eq.s32.totalorder %v2338_v50, %v2336_v49 }
 0x14c   : > { %v1504_v7 = vsel %vm810_vm14, 1.0, %v1974_v56 }
 0x14d   : > { %v858_v61 = vadd.f32 %v1504_v7, %v650_v38 }
 0x14e   : > { %v497_v32 = vpop.permute.xlu1 %496 }
 0x14f   : > { %vm523_vm0 = vcmp.eq.s32.totalorder %v2338_v50, %v497_v32  ;;  %1626 = vmatmul.mubr.f32.gmra.mrb[8].mxu0 %v858_v61 }
 0x150   : > { %vm603_vm1 = vmand %vm523_vm0, %vm587_vm15 }
 0x151   : > { %v1489_v34 = vsel %vm603_vm1, 1.0, %v1974_v56  ;;  %vm525_vm1 = vcmp.eq.s32.totalorder %v2338_v50, %v2410_v40 }
 0x152   : > { %v651_v47 = vadd.f32 %v1489_v34, %v443_v44  ;;  %v500_v39 = vpop.permute.xlu1 %499 }
 0x153   : > { %vm524_vm9 = vcmp.eq.s32.totalorder %v2338_v50, %v500_v39 }
 0x156   : > { %v564_v30 = vpop.permute.xlu1 %563 }
 0x157   : > { %vm588_vm6 = vcmp.eq.s32.totalorder %v564_v30, 1 }
 0x158   : > { %vm604_vm10 = vmand %vm524_vm9, %vm588_vm6 }
 0x159   : > { %v1490_v5 = vsel %vm604_vm10, 1.0, %v1974_v56 }
 0x15a   : > { %v652_v6 = vadd.f32 %v1490_v5, %v444_v11 }
 0x15b   : > { %v359_v26 = vpop.permute.xlu1 %358 }
 0x15c   : > { %vm381_vm8 = vcmp.eq.s32.totalorder %v359_v26, 1 }
 0x15d   : > { %vm397_vm14 = vmand %vm301_vm12, %vm381_vm8  ;;  %vm590_vm8 = vcmp.eq.s32.totalorder %v2417_v57, 1 }
 0x15e   : > { %v1475_v28 = vsel %vm397_vm14, 1.0, %v1974_v56  ;;  %vm383_vm14 = vcmp.eq.s32.totalorder %v2345_v52, 1 }
 0x15f   : > { %v445_v49 = vadd.f32 %v1475_v28, %v2359_v60 }
 0x160   : > { %v705_v41 = vpop.permute.xlu1 %704 }
 0x161   : > { %vm731_vm2 = vcmp.eq.s32.totalorder %v2338_v50, %v705_v41 }
 0x162   : > { %vm811_vm3 = vmand %vm731_vm2, %vm795_vm13 }
 0x163   : > { %v1505_v63 = vsel %vm811_vm3, 1.0, %v1974_v56 }
 0x164   : > { %v859_v42 = vadd.f32 %v1505_v63, %v651_v47 }
 0x165   : > { %v282_v2 = vpop.permute.xlu1 %281 }
 0x166   : > { %1628 = vmatprep.mubr.f32.mxu0 %v859_v42  ;;  %vm302_vm7 = vcmp.eq.s32.totalorder %v2338_v50, %v282_v2 }
 0x169   : > { %v362_v3 = vpop.permute.xlu1 %361 }
 0x16a   : > { %vm382_vm3 = vcmp.eq.s32.totalorder %v362_v3, 1 }
 0x16b   : > { %vm398_vm10 = vmand %vm302_vm7, %vm382_vm3 }
 0x16c   : > { %v1476_v45 = vsel %vm398_vm10, 1.0, %v1974_v56 }
 0x16d   : > { %v446_v27 = vadd.f32 %v1476_v45, %v2359_v60 }
 0x16e   : > { %v772_v33 = vpop.permute.xlu1 %771 }
 0x16f   : > { %vm796_vm15 = vcmp.eq.s32.totalorder %v772_v33, 1 }
 0x170   : > { %vm812_vm0 = vmand %vm732_vm11, %vm796_vm15  ;;  %vm734_vm15 = vcmp.eq.s32.totalorder %v2338_v50, %v714_v15 }
 0x171   : > { %v1506_v21 = vsel %vm812_vm0, 1.0, %v1974_v56 }
 0x172   : > { %v860_v10 = vadd.f32 %v1506_v21, %v652_v6 }
 0x173   : > { %v567_v13 = vpop.permute.xlu1 %566 }
 0x174   : > { %vm589_vm13 = vcmp.eq.s32.totalorder %v567_v13, 1  ;;  %1629 = vmatmul.mubr.f32.gmra.mrb[10].mxu0 %v860_v10 }
 0x175   : > { %vm605_vm2 = vmand %vm525_vm1, %vm589_vm13 }
 0x176   : > { %v1491_v25 = vsel %vm605_vm2, 1.0, %v1974_v56  ;;  %vm591_vm2 = vcmp.eq.s32.totalorder %v2425_v59, 1 }
 0x177   : > { %v653_v29 = vadd.f32 %v1491_v25, %v445_v49  ;;  %v506_v14 = vpop.permute.xlu1 %505 }
 0x178   : > { %vm526_vm9 = vcmp.eq.s32.totalorder %v2338_v50, %v506_v14 }
 0x179   : > { %vm606_vm11 = vmand %vm526_vm9, %vm590_vm8 }
 0x17a   : > { %v1492_v23 = vsel %vm606_vm11, 1.0, %v1974_v56  ;;  %vm735_vm11 = vcmp.eq.s32.totalorder %v2338_v50, %v717_v22 }
 0x17b   : > { %v654_v57 = vadd.f32 %v1492_v23, %v446_v27 }
 0x17c   : > { %v285_v18 = vpop.permute.xlu1 %284 }
 0x17d   : > { %vm303_vm12 = vcmp.eq.s32.totalorder %v2338_v50, %v285_v18 }
 0x17e   : > { %vm399_vm0 = vmand %vm303_vm12, %vm383_vm14 }
 0x17f   : > { %v1477_v35 = vsel %vm399_vm0, 1.0, %v1974_v56 }
 0x180   : > { %v447_v52 = vadd.f32 %v1477_v35, %v2359_v60 }
 0x181   : > { %v711_v46 = vpop.permute.xlu1 %710 }
 0x182   : > { %vm733_vm4 = vcmp.eq.s32.totalorder %v2338_v50, %v711_v46 }
 0x185   : > { %v775_v9 = vpop.permute.xlu1 %774 }
 0x186   : > { %vm797_vm5 = vcmp.eq.s32.totalorder %v775_v9, 1 }
 0x187   : > { %vm813_vm6 = vmand %vm733_vm4, %vm797_vm5 }
 0x188   : > { %v1507_v40 = vsel %vm813_vm6, 1.0, %v1974_v56  ;;  %vm304_vm6 = vcmp.eq.s32.totalorder %v2338_v50, %v2349_v54 }
 0x189   : > { %v861_v48 = vadd.f32 %v1507_v40, %v653_v29 }
 0x18a   : > { %v368_v17 = vpop.permute.xlu1 %367 }
 0x18b   : > { %1631 = vmatprep.mubr.f32.mxu0 %v861_v48  ;;  %vm384_vm5 = vcmp.eq.s32.totalorder %v368_v17, 1 }
 0x18c   : > { %vm400_vm9 = vmand %vm304_vm6, %vm384_vm5 }
 0x18d   : > { %v1478_v19 = vsel %vm400_vm9, 1.0, %v1974_v56 }
 0x18e   : > { %v448_v7 = vadd.f32 %v1478_v19, %v2359_v60 }
 0x18f   : > { %v778_v8 = vpop.permute.xlu1 %777 }
 0x190   : > { %vm798_vm1 = vcmp.eq.s32.totalorder %v778_v8, 1 }
 0x191   : > { %vm814_vm13 = vmand %vm734_vm15, %vm798_vm1  ;;  %vm800_vm15 = vcmp.eq.s32.totalorder %v784_v20, 1 }
 0x192   : > { %v1508_v31 = vsel %vm814_vm13, 1.0, %v1974_v56 }
 0x193   : > { %v862_v0 = vadd.f32 %v1508_v31, %v654_v57 }
 0x194   : > { %v509_v43 = vpop.permute.xlu1 %508 }
 0x195   : > { %vm527_vm3 = vcmp.eq.s32.totalorder %v2338_v50, %v509_v43  ;;  %1632 = vmatmul.mubr.f32.gmra.mrb[12].mxu0 %v862_v0 }
 0x196   : > { %vm607_vm4 = vmand %vm527_vm3, %vm591_vm2 }
 0x197   : > { %v1493_v51 = vsel %vm607_vm4, 1.0, %v1974_v56 }
 0x198   : > { %v655_v55 = vadd.f32 %v1493_v51, %v447_v52  ;;  %v512_v53 = vpop.permute.xlu1 %511 }
 0x199   : > { %vm528_vm10 = vcmp.eq.s32.totalorder %v2338_v50, %v512_v53 }
 0x19c   : > { %v576_v36 = vpop.permute.xlu1 %575 }
 0x19d   : > { %vm592_vm7 = vcmp.eq.s32.totalorder %v576_v36, 1 }
 0x19e   : > { %vm608_vm8 = vmand %vm528_vm10, %vm592_vm7 }
 0x19f   : > { %v1494_v12 = vsel %vm608_vm8, 1.0, %v1974_v56 }
 0x1a0   : > { %v656_v61 = vadd.f32 %v1494_v12, %v448_v7 }
 0x1a1   : > { %v781_v59 = vpop.permute.xlu1 %780 }
 0x1a2   : > { %vm799_vm12 = vcmp.eq.s32.totalorder %v781_v59, 1 }
 0x1a3   : > { %vm815_vm14 = vmand %vm735_vm11, %vm799_vm12 }
 0x1a4   : > { %v1509_v38 = vsel %vm815_vm14, 1.0, %v1974_v56 }
 0x1a5   : > { %v863_v54 = vadd.f32 %v1509_v38, %v655_v55  ;;  %v720_v58 = vpop.permute.xlu1 %719 }
 0x1a6   : > { %vm736_vm0 = vcmp.eq.s32.totalorder %v2338_v50, %v720_v58 }
 0x1a7   : > { %vm816_vm1 = vmand %vm736_vm0, %vm800_vm15  ;;  %1634 = vmatprep.mubr.f32.mxu0 %v863_v54 }
 0x1a8   : > { %v1510_v32 = vsel %vm816_vm1, 1.0, %v1974_v56 }
 0x1a9   : > { %v864_v44 = vadd.f32 %v1510_v32, %v656_v61 }
 0x1ab   : > { %1635 = vmatmul.mubr.f32.gmra.mrb[14].mxu0 %v864_v44 }
 0x1d7   : > { %v1615_v34 = vpop.f32.mrb[0].mxu0 }
 0x1d8   : > { %v947_v47 = vpop.f32.mrb[1].mxu0  ;;  %v1027_v30 = vmax.f32 %v1615_v34, 0.0 }
 0x1d9   : > { %v1026_v39 = vmax.f32 %v947_v47, 0.0 }
 0x1db   : > { %1669 = vmatprep.mubr.f32.mxu1 %v1026_v39 }
 0x1dc   : > { %1670 = vmatmul.mubr.f32.vlgmr.msra.gmra.mrb[0].mxu1 %v1027_v30 }
 0x1df   : > { %v1618_v16 = vpop.f32.mrb[2].mxu0 }
 0x1e0   : > { %v957_v60 = vpop.f32.mrb[3].mxu0  ;;  %v1029_v37 = vmax.f32 %v1618_v16, 0.0 }
 0x1e1   : > { %v1028_v24 = vmax.f32 %v957_v60, 0.0 }
 0x1e3   : > { %v1621_v26 = vpop.f32.mrb[4].mxu0  ;;  %1672 = vmatprep.mubr.f32.mxu1 %v1028_v24 }
 0x1e4   : > { %v967_v50 = vpop.f32.mrb[5].mxu0  ;;  %1673 = vmatmul.mubr.f32.gmra.mrb[2].mxu1 %v1029_v37  ;;  %v1031_v41 = vmax.f32 %v1621_v26, 0.0 }
 0x1e5   : > { %v1030_v62 = vmax.f32 %v967_v50, 0.0 }
 0x1e7   : > { %1675 = vmatprep.mubr.f32.mxu1 %v1030_v62 }
 0x1e8   : > { %1676 = vmatmul.mubr.f32.gmra.mrb[4].mxu1 %v1031_v41 }
 0x201   : > { %v1624_v56 = vpop.f32.mrb[6].mxu0 }
 0x202   : > { %v977_v63 = vpop.f32.mrb[7].mxu0  ;;  %v1033_v2 = vmax.f32 %v1624_v56, 0.0 }
 0x203   : > { %v1032_v42 = vmax.f32 %v977_v63, 0.0 }
 0x205   : > { %1678 = vmatprep.mubr.f32.mxu1 %v1032_v42 }
 0x206   : > { %1679 = vmatmul.mubr.f32.gmra.mrb[6].mxu1 %v1033_v2 }
 0x222   : > { %v1627_v3 = vpop.f32.mrb[8].mxu0 }
 0x223   : > { %v987_v1 = vpop.f32.mrb[9].mxu0  ;;  %v1035_v5 = vmax.f32 %v1627_v3, 0.0 }
 0x224   : > { %v1034_v4 = vmax.f32 %v987_v1, 0.0 }
 0x226   : > { %1681 = vmatprep.mubr.f32.mxu1 %v1034_v4 }
 0x227   : > { %1682 = vmatmul.mubr.f32.gmra.mrb[8].mxu1 %v1035_v5 }
 0x247   : > { %v1630_v11 = vpop.f32.mrb[10].mxu0 }
 0x248   : > { %v997_v33 = vpop.f32.mrb[11].mxu0  ;;  %v1037_v21 = vmax.f32 %v1630_v11, 0.0 }
 0x249   : > { %v1036_v6 = vmax.f32 %v997_v33, 0.0 }
 0x24b   : > { %1684 = vmatprep.mubr.f32.mxu1 %v1036_v6 }
 0x24c   : > { %1685 = vmatmul.mubr.f32.gmra.mrb[10].mxu1 %v1037_v21 }
 0x268   : > { %v1633_v28 = vpop.f32.mrb[12].mxu0 }
 0x269   : > { %v1007_v10 = vpop.f32.mrb[13].mxu0  ;;  %v1039_v49 = vmax.f32 %v1633_v28, 0.0 }
 0x26a   : > { %v1038_v13 = vmax.f32 %v1007_v10, 0.0 }
 0x26c   : > { %1687 = vmatprep.mubr.f32.mxu1 %v1038_v13 }
 0x26d   : > { %1688 = vmatmul.mubr.f32.gmra.mrb[12].mxu1 %v1039_v49 }
 0x27e   : > { %v1636_v25 = vpop.f32.mrb[14].mxu0 }
 0x27f   : > { %v1017_v29 = vpop.f32.mrb[15].mxu0  ;;  %v1041_v18 = vmax.f32 %v1636_v25, 0.0 }
 0x280   : > { %v1040_v14 = vmax.f32 %v1017_v29, 0.0 }
 0x282   : > { %1690 = vmatprep.mubr.f32.mxu1 %v1040_v14 }
 0x283   : > { %1691 = vmatmul.mubr.f32.gmra.mrb[14].mxu1 %v1041_v18 }
 0x2af   : > { %v1671_v46 = vpop.f32.mrb[0].mxu1 }
 0x2b0   : > { %1205 = vmax.xlane.f32.xlu0 %v1671_v46  ;;  %v1124_v9 = vpop.f32.mrb[1].mxu1 }
 0x2b1   : > { %1203 = vmax.xlane.f32.xlu1 %v1124_v9 }
 0x2b7   : > { %v1674_v40 = vpop.f32.mrb[2].mxu1 }
 0x2b8   : > { %1209 = vmax.xlane.f32.xlu1 %v1674_v40  ;;  %v1134_v48 = vpop.f32.mrb[3].mxu1 }
 0x2b9   : > { %1207 = vmax.xlane.f32.xlu0 %v1134_v48 }
 0x2bb   : > { %v1677_v17 = vpop.f32.mrb[4].mxu1 }
 0x2bc   : > { %1213 = vmax.xlane.f32.xlu1 %v1677_v17  ;;  %v1144_v45 = vpop.f32.mrb[5].mxu1 }
 0x2bd   : > { %1211 = vmax.xlane.f32.xlu0 %v1144_v45 }
 0x2d9   : > { %v1680_v23 = vpop.f32.mrb[6].mxu1 }
 0x2da   : > { %1217 = vmax.xlane.f32.xlu1 %v1680_v23  ;;  %v1154_v27 = vpop.f32.mrb[7].mxu1 }
 0x2db   : > { %1215 = vmax.xlane.f32.xlu0 %v1154_v27 }
 0x2fa   : > { %v2677_v15 = vpop.f32.mrb[8].mxu1 }
 0x2fb   : > { %1221 = vmax.xlane.f32.xlu1 %v2677_v15  ;;  %v2680_v8 = vpop.f32.mrb[9].mxu1 }
 0x2fc   : > { %1219 = vmax.xlane.f32.xlu0 %v2680_v8 }
 0x31f   : > { %v2683_v57 = vpop.f32.mrb[10].mxu1 }
 0x320   : > { %1225 = vmax.xlane.f32.xlu1 %v2683_v57  ;;  %v2686_v31 = vpop.f32.mrb[11].mxu1 }
 0x321   : > { %1223 = vmax.xlane.f32.xlu0 %v2686_v31 }
 0x33d   : > { %v1206_v52 = vpop.xlane.xlu0 %1205 }
 0x33e   : > { %v1204_v43 = vpop.xlane.xlu1 %1203  ;;  %v2695_v55 = vsub.f32 %v1671_v46, %v1206_v52 }
 0x33f   : > { %v2697_v36 = vsub.f32 %v1124_v9, %v1204_v43 }
 0x340   : > { %v2689_v35 = vpop.f32.mrb[12].mxu1  ;;  %v1253_v22 = vmul.f32 1.442695, %v2695_v55 }
 0x341   : > { %1229 = vmax.xlane.f32.xlu1 %v2689_v35  ;;  %v2692_v0 = vpop.f32.mrb[13].mxu1  ;;  %v1251_v19 = vmul.f32 1.442695, %v2697_v36 }
 0x342   : > { %1227 = vmax.xlane.f32.xlu0 %v2692_v0  ;;  %1843 = vpow2.f32 %v1253_v22 }
 0x343   : > { %1845 = vpow2.f32 %v1251_v19 }
 0x345   : > { %v1210_v51 = vpop.xlane.xlu1 %1209 }
 0x346   : > { %v1208_v53 = vpop.xlane.xlu0 %1207  ;;  %v2700_v59 = vsub.f32 %v1674_v40, %v1210_v51 }
 0x347   : > { %v2703_v20 = vsub.f32 %v1134_v48, %v1208_v53 }
 0x348   : > { %v1257_v7 = vmul.f32 1.442695, %v2700_v59 }
 0x349   : > { %v1214_v12 = vpop.xlane.xlu1 %1213  ;;  %v1255_v58 = vmul.f32 1.442695, %v2703_v20 }
 0x34a   : > { %v1212_v38 = vpop.xlane.xlu0 %1211  ;;  %v2706_v54 = vsub.f32 %v1677_v17, %v1214_v12  ;;  %1847 = vpow2.f32 %v1257_v7 }
 0x34b   : > { %v2709_v61 = vsub.f32 %v1144_v45, %v1212_v38  ;;  %1849 = vpow2.f32 %v1255_v58 }
 0x34c   : > { %v1261_v32 = vmul.f32 1.442695, %v2706_v54  ;;  %v1844_v39 = vpop.eup %1843 }
 0x34d   : > { %v1259_v44 = vmul.f32 1.442695, %v2709_v61  ;;  %v1846_v30 = vpop.eup %1845 }
 0x34e   : > { %1851 = vpow2.f32 %v1261_v32 }
 0x34f   : > { %1853 = vpow2.f32 %v1259_v44 }
 0x354   : > { %v1848_v16 = vpop.eup %1847 }
 0x355   : > { %v1850_v60 = vpop.eup %1849 }
 0x356   : > { %v2713_v34 = vpop.f32.mrb[14].mxu1 }
 0x357   : > { %1233 = vmax.xlane.f32.xlu1 %v2713_v34  ;;  %v2716_v47 = vpop.f32.mrb[15].mxu1 }
 0x358   : > { %1231 = vmax.xlane.f32.xlu0 %v2716_v47  ;;  %v1852_v24 = vpop.eup %1851 }
 0x359   : > { %v1854_v37 = vpop.eup %1853 }
 0x35b   : > { %1285 = vadd.xlane.f32.xlu1 %v1844_v39 }
 0x35c   : > { %1283 = vadd.xlane.f32.xlu0 %v1846_v30 }
 0x35f   : > { %1289 = vadd.xlane.f32.xlu1 %v1848_v16 }
 0x360   : > { %1287 = vadd.xlane.f32.xlu0 %v1850_v60 }
 0x363   : > { %1293 = vadd.xlane.f32.xlu1 %v1852_v24 }
 0x364   : > { %1291 = vadd.xlane.f32.xlu0 %v1854_v37 }
 0x367   : > { %v1218_v26 = vpop.xlane.xlu1 %1217 }
 0x368   : > { %v2719_v50 = vsub.f32 %v1680_v23, %v1218_v26  ;;  %v1216_v62 = vpop.xlane.xlu0 %1215 }
 0x369   : > { %v2721_v41 = vsub.f32 %v1154_v27, %v1216_v62 }
 0x36a   : > { %v1265_v56 = vmul.f32 1.442695, %v2719_v50 }
 0x36b   : > { %v1263_v63 = vmul.f32 1.442695, %v2721_v41 }
 0x36c   : > { %1855 = vpow2.f32 %v1265_v56 }
 0x36d   : > { %1857 = vpow2.f32 %v1263_v63 }
 0x376   : > { %v1856_v42 = vpop.eup %1855 }
 0x377   : > { %v1858_v2 = vpop.eup %1857  ;;  %1297 = vadd.xlane.f32.xlu1 %v1856_v42 }
 0x378   : > { %1295 = vadd.xlane.f32.xlu0 %v1858_v2 }
 0x388   : > { %v1222_v3 = vpop.xlane.xlu1 %1221 }
 0x389   : > { %v2726_v1 = vsub.f32 %v2677_v15, %v1222_v3  ;;  %v1220_v4 = vpop.xlane.xlu0 %1219 }
 0x38a   : > { %v2729_v5 = vsub.f32 %v2680_v8, %v1220_v4 }
 0x38b   : > { %v1269_v11 = vmul.f32 1.442695, %v2726_v1 }
 0x38c   : > { %v1267_v33 = vmul.f32 1.442695, %v2729_v5 }
 0x38d   : > { %1859 = vpow2.f32 %v1269_v11 }
 0x38e   : > { %1861 = vpow2.f32 %v1267_v33 }
 0x397   : > { %v1860_v6 = vpop.eup %1859 }
 0x398   : > { %v1862_v21 = vpop.eup %1861  ;;  %1301 = vadd.xlane.f32.xlu1 %v1860_v6 }
 0x399   : > { %1299 = vadd.xlane.f32.xlu0 %v1862_v21 }
 0x3ad   : > { %v1226_v28 = vpop.xlane.xlu1 %1225 }
 0x3ae   : > { %v2734_v10 = vsub.f32 %v2683_v57, %v1226_v28  ;;  %v1224_v13 = vpop.xlane.xlu0 %1223 }
 0x3af   : > { %v2737_v49 = vsub.f32 %v2686_v31, %v1224_v13 }
 0x3b0   : > { %v1273_v25 = vmul.f32 1.442695, %v2734_v10 }
 0x3b1   : > { %v1271_v29 = vmul.f32 1.442695, %v2737_v49 }
 0x3b2   : > { %1863 = vpow2.f32 %v1273_v25 }
 0x3b3   : > { %1865 = vpow2.f32 %v1271_v29 }
 0x3bc   : > { %v1864_v14 = vpop.eup %1863 }
 0x3bd   : > { %v1866_v18 = vpop.eup %1865  ;;  %1305 = vadd.xlane.f32.xlu1 %v1864_v14 }
 0x3be   : > { %1303 = vadd.xlane.f32.xlu0 %v1866_v18 }
 0x3ce   : > { %v1230_v46 = vpop.xlane.xlu1 %1229 }
 0x3cf   : > { %v2742_v9 = vsub.f32 %v2689_v35, %v1230_v46  ;;  %v1228_v40 = vpop.xlane.xlu0 %1227 }
 0x3d0   : > { %v2745_v48 = vsub.f32 %v2692_v0, %v1228_v40 }
 0x3d1   : > { %v1277_v17 = vmul.f32 1.442695, %v2742_v9 }
 0x3d2   : > { %v1275_v45 = vmul.f32 1.442695, %v2745_v48 }
 0x3d3   : > { %1867 = vpow2.f32 %v1277_v17 }
 0x3d4   : > { %1869 = vpow2.f32 %v1275_v45 }
 0x3dd   : > { %v1868_v23 = vpop.eup %1867 }
 0x3de   : > { %v1870_v27 = vpop.eup %1869  ;;  %1309 = vadd.xlane.f32.xlu1 %v1868_v23 }
 0x3df   : > { %1307 = vadd.xlane.f32.xlu0 %v1870_v27 }
 0x3e4   : > { %v1234_v15 = vpop.xlane.xlu1 %1233 }
 0x3e5   : > { %v2750_v8 = vsub.f32 %v2713_v34, %v1234_v15  ;;  %v1232_v57 = vpop.xlane.xlu0 %1231 }
 0x3e6   : > { %v2753_v31 = vsub.f32 %v2716_v47, %v1232_v57 }
 0x3e7   : > { %v1281_v35 = vmul.f32 1.442695, %v2750_v8 }
 0x3e8   : > { %v1279_v0 = vmul.f32 1.442695, %v2753_v31  ;;  %v1286_v43 = vpop.xlane.xlu1 %1285 }
 0x3e9   : > { %1871 = vpow2.f32 %v1281_v35  ;;  %v1284_v52 = vpop.xlane.xlu0 %1283 }
 0x3ea   : > { %1873 = vpow2.f32 %v1279_v0 }
 0x3eb   : > { %1875 = vlog2.f32 %v1286_v43 }
 0x3ec   : > { %1877 = vlog2.f32 %v1284_v52  ;;  %v1290_v51 = vpop.xlane.xlu1 %1289 }
 0x3ed   : > { %1879 = vlog2.f32 %v1290_v51  ;;  %v1288_v53 = vpop.xlane.xlu0 %1287 }
 0x3ee   : > { %1881 = vlog2.f32 %v1288_v53 }
 0x3f0   : > { %v1294_v22 = vpop.xlane.xlu1 %1293 }
 0x3f1   : > { %1883 = vlog2.f32 %v1294_v22  ;;  %v1292_v19 = vpop.xlane.xlu0 %1291 }
 0x3f2   : > { %1885 = vlog2.f32 %v1292_v19 }
 0x3f3   : > { %v1872_v12 = vpop.eup %1871 }
 0x3f4   : > { %v1874_v38 = vpop.eup %1873  ;;  %1313 = vadd.xlane.f32.xlu1 %v1872_v12 }
 0x3f5   : > { %v1876_v7 = vpop.eup %1875  ;;  %1311 = vadd.xlane.f32.xlu0 %v1874_v38 }
 0x3f6   : > { %v1878_v58 = vpop.eup %1877  ;;  %v1318_v32 = vmul.f32 0.6931472, %v1876_v7 }
 0x3f7   : > { %v1880_v44 = vpop.eup %1879  ;;  %v1316_v34 = vmul.f32 0.6931472, %v1878_v58 }
 0x3f8   : > { %v1882_v47 = vpop.eup %1881  ;;  %v1348_v39 = vsub.f32 %v2695_v55, %v1318_v32  ;;  %v1322_v30 = vmul.f32 0.6931472, %v1880_v44 }
 0x3f9   : > { %v1347_v16 = vsub.f32 %v2697_v36, %v1316_v34  ;;  %v1320_v60 = vmul.f32 0.6931472, %v1882_v47 }
 0x3fa   : > { %1364 = vst [vmem:[%s2762_s20 + $0x8] sm:$0xff] %v1348_v39  ;;  %v1350_v24 = vsub.f32 %v2700_v59, %v1322_v30 }
 0x3fb   : > { %v1884_v37 = vpop.eup %1883  ;;  %1363 = vst [vmem:[%s2762_s20] sm:$0xff] %v1347_v16  ;;  %v1349_v26 = vsub.f32 %v2703_v20, %v1320_v60 }
 0x3fc   : > { %v1886_v55 = vpop.eup %1885  ;;  %1366 = vst [vmem:[%s2762_s20 + $0x18] sm:$0xff] %v1350_v24  ;;  %v1326_v62 = vmul.f32 0.6931472, %v1884_v37 }
 0x3fd   : > { %1365 = vst [vmem:[%s2762_s20 + $0x10] sm:$0xff] %v1349_v26  ;;  %v1324_v36 = vmul.f32 0.6931472, %v1886_v55 }
 0x3fe   : > { %v1352_v56 = vsub.f32 %v2706_v54, %v1326_v62 }
 0x3ff   : > { %v1351_v63 = vsub.f32 %v2709_v61, %v1324_v36 }
 0x400   : > { %1368 = vst [vmem:[%s2762_s20 + $0x28] sm:$0xff] %v1352_v56 }
 0x401   : > { %1367 = vst [vmem:[%s2762_s20 + $0x20] sm:$0xff] %v1351_v63 }
 0x404   : > { %v1298_v42 = vpop.xlane.xlu1 %1297 }
 0x405   : > { %1887 = vlog2.f32 %v1298_v42  ;;  %v1296_v59 = vpop.xlane.xlu0 %1295 }
 0x406   : > { %1889 = vlog2.f32 %v1296_v59 }
 0x40f   : > { %v1888_v2 = vpop.eup %1887 }
 0x410   : > { %v1890_v3 = vpop.eup %1889  ;;  %v1330_v20 = vmul.f32 0.6931472, %v1888_v2 }
 0x411   : > { %v1328_v4 = vmul.f32 0.6931472, %v1890_v3 }
 0x412   : > { %v1354_v11 = vsub.f32 %v2719_v50, %v1330_v20 }
 0x413   : > { %v1353_v33 = vsub.f32 %v2721_v41, %v1328_v4 }
 0x414   : > { %1370 = vst [vmem:[%s2762_s20 + $0x38] sm:$0xff] %v1354_v11 }
 0x415   : > { %1369 = vst [vmem:[%s2762_s20 + $0x30] sm:$0xff] %v1353_v33 }
 0x425   : > { %v1302_v54 = vpop.xlane.xlu1 %1301 }
 0x426   : > { %1891 = vlog2.f32 %v1302_v54  ;;  %v1300_v61 = vpop.xlane.xlu0 %1299 }
 0x427   : > { %1893 = vlog2.f32 %v1300_v61 }
 0x430   : > { %v1892_v6 = vpop.eup %1891 }
 0x431   : > { %v1894_v21 = vpop.eup %1893  ;;  %v1334_v28 = vmul.f32 0.6931472, %v1892_v6 }
 0x432   : > { %v1332_v13 = vmul.f32 0.6931472, %v1894_v21 }
 0x433   : > { %v1356_v25 = vsub.f32 %v2726_v1, %v1334_v28 }
 0x434   : > { %v1355_v29 = vsub.f32 %v2729_v5, %v1332_v13 }
 0x435   : > { %1372 = vst [vmem:[%s2762_s20 + $0x48] sm:$0xff] %v1356_v25 }
 0x436   : > { %1371 = vst [vmem:[%s2762_s20 + $0x40] sm:$0xff] %v1355_v29 }
 0x44a   : > { %v1306_v50 = vpop.xlane.xlu1 %1305 }
 0x44b   : > { %1895 = vlog2.f32 %v1306_v50  ;;  %v1304_v41 = vpop.xlane.xlu0 %1303 }
 0x44c   : > { %1897 = vlog2.f32 %v1304_v41 }
 0x455   : > { %v1896_v14 = vpop.eup %1895 }
 0x456   : > { %v1898_v18 = vpop.eup %1897  ;;  %v1338_v46 = vmul.f32 0.6931472, %v1896_v14 }
 0x457   : > { %v1336_v40 = vmul.f32 0.6931472, %v1898_v18 }
 0x458   : > { %v1358_v17 = vsub.f32 %v2734_v10, %v1338_v46 }
 0x459   : > { %v1357_v45 = vsub.f32 %v2737_v49, %v1336_v40 }
 0x45a   : > { %1374 = vst [vmem:[%s2762_s20 + $0x58] sm:$0xff] %v1358_v17 }
 0x45b   : > { %1373 = vst [vmem:[%s2762_s20 + $0x50] sm:$0xff] %v1357_v45 }
 0x46b   : > { %v1310_v1 = vpop.xlane.xlu1 %1309 }
 0x46c   : > { %1899 = vlog2.f32 %v1310_v1  ;;  %v1308_v5 = vpop.xlane.xlu0 %1307 }
 0x46d   : > { %1901 = vlog2.f32 %v1308_v5 }
 0x476   : > { %v1900_v23 = vpop.eup %1899 }
 0x477   : > { %v1902_v27 = vpop.eup %1901  ;;  %v1342_v15 = vmul.f32 0.6931472, %v1900_v23 }
 0x478   : > { %v1340_v57 = vmul.f32 0.6931472, %v1902_v27 }
 0x479   : > { %v1360_v35 = vsub.f32 %v2742_v9, %v1342_v15 }
 0x47a   : > { %v1359_v0 = vsub.f32 %v2745_v48, %v1340_v57 }
 0x47b   : > { %1376 = vst [vmem:[%s2762_s20 + $0x68] sm:$0xff] %v1360_v35 }
 0x47c   : > { %1375 = vst [vmem:[%s2762_s20 + $0x60] sm:$0xff] %v1359_v0 }
 0x481   : > { %v1314_v10 = vpop.xlane.xlu1 %1313 }
 0x482   : > { %1903 = vlog2.f32 %v1314_v10  ;;  %v1312_v49 = vpop.xlane.xlu0 %1311 }
 0x483   : > { %1905 = vlog2.f32 %v1312_v49 }
 0x48c   : > { %v1904_v43 = vpop.eup %1903 }
 0x48d   : > { %v1906_v52 = vpop.eup %1905  ;;  %v1346_v51 = vmul.f32 0.6931472, %v1904_v43 }
 0x48e   : > { %v1344_v53 = vmul.f32 0.6931472, %v1906_v52 }
 0x48f   : > { %v1362_v9 = vsub.f32 %v2750_v8, %v1346_v51 }
 0x490   : > { %v1361_v48 = vsub.f32 %v2753_v31, %v1344_v53 }
 0x491   : > { %1378 = vst [vmem:[%s2762_s20 + $0x78] sm:$0xff] %v1362_v9 }
 0x492   : > { %1377 = vst [vmem:[%s2762_s20 + $0x70] sm:$0xff] %v1361_v48 }
 0x493   : > { %1920 = shalt.err (!%p1917_p3)
}
 0x494   : > { %s1921_s6 = scalar_lea.hbm %s2796_s28, 2048  ;;  %s1925_s9 = scalar_lea.hbm %s2849_s3, 4096 }
 0x495   : > { %p1922_p4 = scmp.ne.s32.totalorder %s2796_s28, %s1921_s6  ;;  %p1926_p9 = scmp.lt.u32.totalorder %s2796_s28, %s2849_s3 }
 0x496   : > { %p1927_p10 = scmp.lt.u32.totalorder %s1925_s9, %s1921_s6  ;;  %p1929_p12 = scmp.lt.u32.totalorder %s1921_s6, %s2796_s28 }
 0x497   : > { %p1923_p7 = pnand %p1922_p4, %p2036_p5 }
 0x498   : > { %p1928_p11 = por %p1927_p10, %p1926_p9 }
 0x499   : > { %p1924_p8 = pneg %p1923_p7 }
 0x49a   : > { %p1930_p13 = por %p1929_p12, %p1928_p11 }
 0x49c   : > { %p1931_p0 = pnand %p1930_p13, %p1924_p8 }
 0x49e   : > { %1934 = shalt.err (!%p1931_p0)
}
 0x49f   : > { %s1976_s17 = smov 128   ;;  %s1977_s19 = smov 8  }
 0x4a0   : > { %1757 = dma.vmem_to_hbm [thread:$0]  (%p2036_p5), %s2798_s25, 2048, %s2796_s28, %s2805_s16, %s1976_s17, %s1976_s17, %s1977_s19  }
 0x4a1 PF: > { %p1763_p1 = scmp.ge.s32.totalorder %s1969_s15, 2  ;;  %s1408_s20 = sand.u32 1, %s1957_s12  }
 0x4a2   : > { %s1409_s24 = scalar_lea.sflag [#allocation3], %s1408_s20 }
 0x4a3   : > { %p1760_p2 = pnand %p1763_p1, %p2040_p6 }
 0x4a5   : > { %1952 = dma.done.wait (!%p1760_p2), %s1409_s24, 2048  }
 0x4a6   : > { %1954 = vsyncadd (!%p1760_p2), %s1409_s24, 4294965248  ;;  %p13_p3 = scmp.ge.s32.totalorder %s2023_s18, 4   ;;  %s2860_s12 = smov %s1961_s13 }
 0x4a7   : > { %s2861_s13 = smov %s1965_s14  ;;  %s2862_s14 = smov %s2034_s21 }
 0x4a8   : > { %s2863_s15 = smov %s2023_s18  ;;  %15 = sbr.rel (!%p13_p3) target bundleno = 3 (0x3), region = 67 }
 0x4af   :  { %1414 = vsyncpa [#allocation3], 1 }
 0x4b0   :  { %1416 = vsyncpa [#allocation3 + $0x1], 1 }

</bundles_post_ra>
